<compile_context>
chip_gen: v6e
topology: v6e:2x2x1
jax: 0.10.0
libtpu: 0.0.40
codegen_flags: <defaults>
</compile_context>

<pallas_src>
import jax
import jax.numpy as jnp
from jax.experimental import pallas as pl
from jax.experimental.pallas import tpu as pltpu


def _policy_head_kernel(x_ref, w1_ref, b1_ref, w2_ref, b2_ref, o_ref,
                        h_ref, acc_ref):
    # x_ref : (tm, H)          bf16  hidden-state row tile (full H)
    # w1_ref: (H, tk)          bf16  MLP weight column tile (valid only j == 0)
    # b1_ref: (1, tk)          f32   MLP bias tile          (valid only j == 0)
    # w2_ref: (tk, tv)         bf16  lm_head weight tile
    # b2_ref: (1, tv)          f32   lm_head bias tile
    # o_ref : (tm, tv)         bf16  logits tile
    # h_ref : (H//tk, tm, tk)  bf16  scratch: cached gelu(x@W1+b1) slices
    # acc_ref: (tm, tv)        f32   scratch: accumulator
    j = pl.program_id(1)
    k = pl.program_id(2)
    nk = pl.num_programs(2)

    # First layer: compute the k-th slice of h once per (i, k), reuse across j.
    # Activation (bias add + gelu) stays in f32 on the MXU accumulator output.
    @pl.when(j == 0)
    def _():
        h = jnp.dot(x_ref[...], w1_ref[...],
                    preferred_element_type=jnp.float32)
        h = jax.nn.gelu(h + b1_ref[...])
        h_ref[k] = h.astype(h_ref.dtype)

    @pl.when(k == 0)
    def _():
        acc_ref[...] = jnp.zeros_like(acc_ref)

    acc_ref[...] += jnp.dot(h_ref[k], w2_ref[...],
                            preferred_element_type=jnp.float32)

    # Finalize: add lm_head bias once and write back in the output dtype.
    @pl.when(k == nk - 1)
    def _():
        o_ref[...] = (acc_ref[...] + b2_ref[...]).astype(o_ref.dtype)


def policy_head_pallas(x2d, w1, b1, w2, b2, *,
                       tm=256, tv=1024, tk=512, out_dtype=jnp.bfloat16):
    """logits = gelu(x2d @ w1 + b1) @ w2 + b2, tiled for TPU."""
    M, H = x2d.shape
    V = w2.shape[1]

    # Clamp tiles to the problem size; keep lane dims 128-aligned.
    tv = min(tv, V)
    tk = min(tk, H)
    assert V % tv == 0 and tv % 128 == 0, "vocab tile must be a multiple of 128"
    assert H % tk == 0 and tk % 128 == 0, "hidden tile must be a multiple of 128"

    # Pad M (batch*seq rows) up to a full row tile.
    Mp = max(tm, ((M + tm - 1) // tm) * tm)
    if Mp != M:
        x2d = jnp.pad(x2d, ((0, Mp - M), (0, 0)))

    # Enforce operand dtypes: bf16 weights/activations, f32 biases.
    x2d = x2d.astype(jnp.bfloat16)
    w1 = w1.astype(jnp.bfloat16)
    w2 = w2.astype(jnp.bfloat16)
    b1 = b1.astype(jnp.float32)
    b2 = b2.astype(jnp.float32)

    nm, nv, nk = Mp // tm, V // tv, H // tk
    grid = (nm, nv, nk)

    # W1/b1 are only consumed at j == 0; pin their block index for j > 0 so
    # the auto-pipeline does not re-DMA them for every vocab tile.
    def w1_map(i, j, k):
        return (0, jnp.where(j == 0, k, 0))

    def b1_map(i, j, k):
        return (0, jnp.where(j == 0, k, 0))

    cost = pl.CostEstimate(
        flops=2 * Mp * H * H + 2 * Mp * H * V,
        transcendentals=Mp * H,
        bytes_accessed=int(2 * (Mp * H + H * H + H * V + Mp * V)
                           + 4 * (H + V)),
    )

    out = pl.pallas_call(
        _policy_head_kernel,
        out_shape=jax.ShapeDtypeStruct((Mp, V), out_dtype),
        grid_spec=pltpu.PrefetchScalarGridSpec(
            num_scalar_prefetch=0,
            grid=grid,
            in_specs=[
                pl.BlockSpec((tm, H), lambda i, j, k: (i, 0)),   # x rows
                pl.BlockSpec((H, tk), w1_map),                   # W1 cols
                pl.BlockSpec((1, tk), b1_map),                   # b1 tile
                pl.BlockSpec((tk, tv), lambda i, j, k: (k, j)),  # W2 tile
                pl.BlockSpec((1, tv), lambda i, j, k: (0, j)),   # b2 tile
            ],
            out_specs=pl.BlockSpec((tm, tv), lambda i, j, k: (i, j)),
            scratch_shapes=[
                pltpu.VMEM((nk, tm, tk), jnp.bfloat16),  # cached h slices
                pltpu.VMEM((tm, tv), jnp.float32),       # f32 accumulator
            ],
        ),
        compiler_params=pltpu.CompilerParams(
            # M tiles shard across TensorCores (megacore).  The V axis is kept
            # "arbitrary" because the h-cache (filled at j == 0) must be
            # reused sequentially by the same core; the k (reduction) axis is
            # last and "arbitrary".
            dimension_semantics=("parallel", "arbitrary", "arbitrary"),
            vmem_limit_bytes=48 * 1024 * 1024,
        ),
        cost_estimate=cost,
    )(x2d, w1, b1, w2, b2)

    return out[:M]


class SyntheticPolicy:
    """Deterministic tiny causal-LM-style policy (embedding + 2-layer head)."""

    def __init__(self, vocab_size, hidden_size, key):
        k_emb, k_w1, k_w2 = jax.random.split(key, 3)
        self.vocab_size = vocab_size
        self.hidden_size = hidden_size
        scale = 1.0 / jnp.sqrt(hidden_size).astype(jnp.float32)
        self.embed = jax.random.normal(
            k_emb, (vocab_size, hidden_size), jnp.float32)
        self.w1 = (jax.random.normal(
            k_w1, (hidden_size, hidden_size), jnp.float32) * scale
        ).astype(jnp.bfloat16)
        self.b1 = jnp.zeros((1, hidden_size), jnp.float32)
        self.w2 = (jax.random.normal(
            k_w2, (hidden_size, vocab_size), jnp.float32) * scale
        ).astype(jnp.bfloat16)
        self.b2 = jnp.zeros((1, vocab_size), jnp.float32)

    def __call__(self, input_ids, attention_mask=None,
                 tm=256, tv=1024, tk=512, **unused):
        B, S = input_ids.shape
        # Glue: embedding gather + flatten (kept in plain JAX).
        hidden = self.embed[input_ids].astype(jnp.bfloat16)   # (B, S, H)
        x2d = hidden.reshape(B * S, self.hidden_size)          # (B*S, H)
        logits2d = policy_head_pallas(
            x2d, self.w1, self.b1, self.w2, self.b2, tm=tm, tv=tv, tk=tk)
        logits = logits2d.reshape(B, S, self.vocab_size)
        # NOTE: like an HF causal LM, logits are returned unmasked; padding
        # exclusion belongs in the loss (multiplying logits by the mask would
        # silently turn masked positions into valid zero logits).
        return {"logits": logits}


class PolicyAndValueWrapper:
    """Mirrors the PyTorch wrapper: forward(**kwargs) -> self.policy(**kwargs)."""

    def __init__(self, policy):
        self.policy = policy

    def forward(self, **kwargs):
        return self.policy(**kwargs)

    __call__ = forward


if __name__ == "__main__":
    key = jax.random.PRNGKey(0)
    k_policy, k_ids = jax.random.split(key)

    # Small shapes, but large enough to exercise a (2, 2, 2) tiled grid,
    # including the j > 0 W1-pinning path and the k-accumulation path.
    batch, seq, hidden, vocab = 2, 128, 256, 512
    tm, tv, tk = 128, 256, 128

    policy = SyntheticPolicy(vocab_size=vocab, hidden_size=hidden, key=k_policy)
    wrapper = PolicyAndValueWrapper(policy)

    input_ids = jax.random.randint(k_ids, (batch, seq), 0, vocab, jnp.int32)
    attention_mask = jnp.ones((batch, seq), jnp.int32)

    out = wrapper(input_ids=input_ids, attention_mask=attention_mask,
                  tm=tm, tv=tv, tk=tk)
    logits = jax.block_until_ready(out["logits"])

    # Pure-JAX reference with identical numerics (bf16 operands, f32 accum,
    # bf16 intermediate h, bf16 logits).
    x2d = policy.embed[input_ids].reshape(batch * seq, hidden).astype(jnp.bfloat16)
    h = jnp.dot(x2d, policy.w1, preferred_element_type=jnp.float32) + policy.b1
    h = jax.nn.gelu(h).astype(jnp.bfloat16)
    ref = jnp.dot(h, policy.w2, preferred_element_type=jnp.float32) + policy.b2
    ref = ref.astype(jnp.bfloat16).astype(jnp.float32).reshape(batch, seq, vocab)

    assert logits.shape == (batch, seq, vocab)
    assert logits.dtype == jnp.bfloat16
    assert jnp.allclose(logits.astype(jnp.float32), ref, atol=2e-2, rtol=2e-2)

    print("KERNEL_OK")
</pallas_src>

<mosaic_0001>
module attributes {stable_mosaic.version = 11 : i64} {
  func.func @_policy_head_kernel(%arg0: i32, %arg1: i32, %arg2: i32, %arg3: memref<128x256xbf16, #tpu.memory_space<vmem>>, %arg4: memref<256x128xbf16, #tpu.memory_space<vmem>>, %arg5: memref<1x128xf32, #tpu.memory_space<vmem>>, %arg6: memref<128x256xbf16, #tpu.memory_space<vmem>>, %arg7: memref<1x256xf32, #tpu.memory_space<vmem>>, %arg8: memref<128x256xbf16, #tpu.memory_space<vmem>>, %arg9: memref<2x128x128xbf16, #tpu.memory_space<vmem>>, %arg10: memref<128x256xf32, #tpu.memory_space<vmem>>) attributes {dimension_semantics = [#tpu.dimension_semantics<parallel>, #tpu.dimension_semantics<arbitrary>, #tpu.dimension_semantics<arbitrary>], iteration_bounds = array<i64: 2, 2, 2>, scalar_prefetch = 0 : i64, scratch_operands = 2 : i64, tpu.core_type = #tpu.core_type<tc>, window_params = [{transform_indices = @transform_0, window_bounds = array<i64: 128, 256>}, {transform_indices = @transform_1, window_bounds = array<i64: 256, 128>}, {transform_indices = @transform_2, window_bounds = array<i64: 1, 128>}, {transform_indices = @transform_3, window_bounds = array<i64: 128, 256>}, {transform_indices = @transform_4, window_bounds = array<i64: 1, 256>}, {transform_indices = @transform_5, window_bounds = array<i64: 128, 256>}]} {
    %c0_i32 = arith.constant 0 : i32
    %0 = arith.cmpi eq, %arg1, %c0_i32 : i32
    %1 = arith.extui %0 : i1 to i32
    %c0_i32_0 = arith.constant 0 : i32
    %2 = arith.cmpi ne, %1, %c0_i32_0 : i32
    scf.if %2 {
      %c0_11 = arith.constant 0 : index
      %c0_12 = arith.constant 0 : index
      %17 = vector.load %arg3[%c0_11, %c0_12] : memref<128x256xbf16, #tpu.memory_space<vmem>>, vector<128x256xbf16>
      %c0_13 = arith.constant 0 : index
      %c0_14 = arith.constant 0 : index
      %18 = vector.load %arg4[%c0_13, %c0_14] : memref<256x128xbf16, #tpu.memory_space<vmem>>, vector<256x128xbf16>
      %cst_15 = arith.constant dense<0.000000e+00> : vector<128x128xf32>
      %19 = tpu.matmul %17, %18, %cst_15 {dimension_numbers = #tpu.dot_dimension_numbers<[1], [0], [0], [1], [0, 0, 1, 1], [], []>} : vector<128x256xbf16>, vector<256x128xbf16>, vector<128x128xf32> -> vector<128x128xf32>
      %c0_16 = arith.constant 0 : index
      %c0_17 = arith.constant 0 : index
      %20 = vector.load %arg5[%c0_16, %c0_17] : memref<1x128xf32, #tpu.memory_space<vmem>>, vector<1x128xf32>
      %21 = vector.broadcast %20 : vector<1x128xf32> to vector<128x128xf32>
      %22 = arith.addf %19, %21 : vector<128x128xf32>
      %23 = arith.mulf %22, %22 : vector<128x128xf32>
      %24 = arith.mulf %22, %23 : vector<128x128xf32>
      %cst_18 = arith.constant 4.471500e-02 : f32
      %25 = vector.broadcast %cst_18 : f32 to vector<128x128xf32>
      %26 = arith.mulf %25, %24 : vector<128x128xf32>
      %27 = arith.addf %22, %26 : vector<128x128xf32>
      %cst_19 = arith.constant 0.797884583 : f32
      %28 = vector.broadcast %cst_19 : f32 to vector<128x128xf32>
      %29 = arith.mulf %28, %27 : vector<128x128xf32>
      %30 = math.tanh %29 : vector<128x128xf32>
      %cst_20 = arith.constant 1.000000e+00 : f32
      %31 = vector.broadcast %cst_20 : f32 to vector<128x128xf32>
      %32 = arith.addf %31, %30 : vector<128x128xf32>
      %cst_21 = arith.constant 5.000000e-01 : f32
      %33 = vector.broadcast %cst_21 : f32 to vector<128x128xf32>
      %34 = arith.mulf %33, %32 : vector<128x128xf32>
      %35 = arith.mulf %22, %34 : vector<128x128xf32>
      %36 = arith.truncf %35 : vector<128x128xf32> to vector<128x128xbf16>
      %37 = arith.index_cast %arg2 : i32 to index
      %c0_22 = arith.constant 0 : index
      %c0_23 = arith.constant 0 : index
      %38 = vector.load %arg9[%37, %c0_22, %c0_23] : memref<2x128x128xbf16, #tpu.memory_space<vmem>>, vector<1x128x128xbf16>
      %39 = vector.shape_cast %38 : vector<1x128x128xbf16> to vector<128x128xbf16>
      %40 = vector.shape_cast %36 : vector<128x128xbf16> to vector<1x128x128xbf16>
      tpu.vector_store %arg9[%37, %c0_22, %c0_23], %40 {strides = array<i32>} : memref<2x128x128xbf16, #tpu.memory_space<vmem>>, vector<1x128x128xbf16>,
    } else {
    }
    %c0_i32_1 = arith.constant 0 : i32
    %3 = arith.cmpi eq, %arg2, %c0_i32_1 : i32
    %4 = arith.extui %3 : i1 to i32
    %c0_i32_2 = arith.constant 0 : i32
    %5 = arith.cmpi ne, %4, %c0_i32_2 : i32
    scf.if %5 {
      %cst_11 = arith.constant 0.000000e+00 : f32
      %17 = vector.broadcast %cst_11 : f32 to vector<128x256xf32>
      %c0_12 = arith.constant 0 : index
      %c0_13 = arith.constant 0 : index
      %18 = vector.load %arg10[%c0_12, %c0_13] : memref<128x256xf32, #tpu.memory_space<vmem>>, vector<128x256xf32>
      tpu.vector_store %arg10[%c0_12, %c0_13], %17 {strides = array<i32>} : memref<128x256xf32, #tpu.memory_space<vmem>>, vector<128x256xf32>,
    } else {
    }
    %c0 = arith.constant 0 : index
    %c0_3 = arith.constant 0 : index
    %6 = vector.load %arg10[%c0, %c0_3] : memref<128x256xf32, #tpu.memory_space<vmem>>, vector<128x256xf32>
    %7 = arith.index_cast %arg2 : i32 to index
    %c0_4 = arith.constant 0 : index
    %c0_5 = arith.constant 0 : index
    %8 = vector.load %arg9[%7, %c0_4, %c0_5] : memref<2x128x128xbf16, #tpu.memory_space<vmem>>, vector<1x128x128xbf16>
    %9 = vector.shape_cast %8 : vector<1x128x128xbf16> to vector<128x128xbf16>
    %c0_6 = arith.constant 0 : index
    %c0_7 = arith.constant 0 : index
    %10 = vector.load %arg6[%c0_6, %c0_7] : memref<128x256xbf16, #tpu.memory_space<vmem>>, vector<128x256xbf16>
    %cst = arith.constant dense<0.000000e+00> : vector<128x256xf32>
    %11 = tpu.matmul %9, %10, %cst {dimension_numbers = #tpu.dot_dimension_numbers<[1], [0], [0], [1], [0, 0, 1, 1], [], []>} : vector<128x128xbf16>, vector<128x256xbf16>, vector<128x256xf32> -> vector<128x256xf32>
    %12 = arith.addf %6, %11 : vector<128x256xf32>
    %c0_8 = arith.constant 0 : index
    %c0_9 = arith.constant 0 : index
    %13 = vector.load %arg10[%c0_8, %c0_9] : memref<128x256xf32, #tpu.memory_space<vmem>>, vector<128x256xf32>
    tpu.vector_store %arg10[%c0_8, %c0_9], %12 {strides = array<i32>} : memref<128x256xf32, #tpu.memory_space<vmem>>, vector<128x256xf32>,
    %c1_i32 = arith.constant 1 : i32
    %14 = arith.cmpi eq, %arg2, %c1_i32 : i32
    %15 = arith.extui %14 : i1 to i32
    %c0_i32_10 = arith.constant 0 : i32
    %16 = arith.cmpi ne, %15, %c0_i32_10 : i32
    scf.if %16 {
      %c0_11 = arith.constant 0 : index
      %c0_12 = arith.constant 0 : index
      %17 = vector.load %arg10[%c0_11, %c0_12] : memref<128x256xf32, #tpu.memory_space<vmem>>, vector<128x256xf32>
      %c0_13 = arith.constant 0 : index
      %c0_14 = arith.constant 0 : index
      %18 = vector.load %arg7[%c0_13, %c0_14] : memref<1x256xf32, #tpu.memory_space<vmem>>, vector<1x256xf32>
      %19 = vector.broadcast %18 : vector<1x256xf32> to vector<128x256xf32>
      %20 = arith.addf %17, %19 : vector<128x256xf32>
      %21 = arith.truncf %20 : vector<128x256xf32> to vector<128x256xbf16>
      %c0_15 = arith.constant 0 : index
      %c0_16 = arith.constant 0 : index
      %22 = vector.load %arg8[%c0_15, %c0_16] : memref<128x256xbf16, #tpu.memory_space<vmem>>, vector<128x256xbf16>
      tpu.vector_store %arg8[%c0_15, %c0_16], %21 {strides = array<i32>} : memref<128x256xbf16, #tpu.memory_space<vmem>>, vector<128x256xbf16>,
    } else {
    }
    return
  }
  func.func @transform_0(%arg0: i32, %arg1: i32, %arg2: i32) -> (i32, i32) {
    %c0_i32 = arith.constant 0 : i32
    %c0_i32_0 = arith.constant 0 : i32
    return %arg0, %c0_i32 : i32, i32
  }
  func.func @transform_1(%arg0: i32, %arg1: i32, %arg2: i32) -> (i32, i32) {
    %c0_i32 = arith.constant 0 : i32
    %0 = arith.cmpi eq, %arg1, %c0_i32 : i32
    %c0_i32_0 = arith.constant 0 : i32
    %1 = arith.select %0, %arg2, %c0_i32_0 : i32
    %c0_i32_1 = arith.constant 0 : i32
    %c0_i32_2 = arith.constant 0 : i32
    return %c0_i32_1, %1 : i32, i32
  }
  func.func @transform_2(%arg0: i32, %arg1: i32, %arg2: i32) -> (i32, i32) {
    %c0_i32 = arith.constant 0 : i32
    %0 = arith.cmpi eq, %arg1, %c0_i32 : i32
    %c0_i32_0 = arith.constant 0 : i32
    %1 = arith.select %0, %arg2, %c0_i32_0 : i32
    %c0_i32_1 = arith.constant 0 : i32
    %c0_i32_2 = arith.constant 0 : i32
    return %c0_i32_1, %1 : i32, i32
  }
  func.func @transform_3(%arg0: i32, %arg1: i32, %arg2: i32) -> (i32, i32) {
    %c0_i32 = arith.constant 0 : i32
    return %arg2, %arg1 : i32, i32
  }
  func.func @transform_4(%arg0: i32, %arg1: i32, %arg2: i32) -> (i32, i32) {
    %c0_i32 = arith.constant 0 : i32
    %c0_i32_0 = arith.constant 0 : i32
    return %c0_i32, %arg1 : i32, i32
  }
  func.func @transform_5(%arg0: i32, %arg1: i32, %arg2: i32) -> (i32, i32) {
    %c0_i32 = arith.constant 0 : i32
    return %arg0, %arg1 : i32, i32
  }
}

</mosaic_0001>

<bundles_post_ra>
// kernel: tpu_custom_call.1
= control target key start
LH: loop header
LB: loop body
LE: loop exit
PB: predicated region body
PF: predicated region fallthrough
CT: control target
= control target key end

     0   :  { %s3359_s0 = inlined_call_operand.hbm [shape: bf16[256,256], index: 0, kind: input, shape index: {}]   ;;  %s3360_s1 = inlined_call_operand.hbm [shape: bf16[256,256], index: 1, kind: input, shape index: {}]   ;;  %s3361_s2 = inlined_call_operand.vmem [shape: f32[1,256], index: 2, kind: input, shape index: {}]   ;;  %s3362_s3 = inlined_call_operand.hbm [shape: bf16[256,512], index: 3, kind: input, shape index: {}]   ;;  %s3363_s4 = inlined_call_operand.vmem [shape: f32[1,512], index: 4, kind: input, shape index: {}]   ;;  %s3364_s5 = inlined_call_operand.hbm [shape: bf16[256,512], index: 5, kind: output, shape index: {}]  }
   0x1   :  { %3386 = sst [smem:[#allocation32_spill]] %s3359_s0 }
   0x2   :  { %3387 = sst [smem:[#allocation33_spill]] %s3360_s1 }
   0x3   :  { %3388 = sst [smem:[#allocation34_spill]] %s3361_s2 }
   0x4   :  { %3389 = sst [smem:[#allocation35_spill]] %s3362_s3 }
   0x5   :  { %3390 = sst [smem:[#allocation36_spill]] %s3363_s4 }
   0x6   :  { %3391 = sst [smem:[#allocation37_spill]] %s3364_s5 }
   0x7   :  { %10 = vsyncpa [#allocation5], 0 }
   0x8   :  { %12 = vsyncpa [#allocation5 + $0x1], 0 }
   0x9   :  { %13 = vsyncpa [#allocation8], 0 }
   0xa   :  { %15 = vsyncpa [#allocation8 + $0x1], 0 }
   0xb   :  { %16 = vsyncpa [#allocation6], 0 }
   0xc   :  { %18 = vsyncpa [#allocation6 + $0x1], 0  ;;  %s2661_s18 = smov 0   ;;  %s2663_s19 = smov 0  }
   0xd   :  { %s2665_s20 = smov 0   ;;  %s2667_s21 = smov 0  }
   0xe   :  { %s2669_s22 = smov 0   ;;  %s2671_s23 = smov 0  }
   0xf   :  { %s2673_s24 = smov 0   ;;  %s2675_s25 = smov 0  }
  0x10   :  { %s2677_s26 = smov 0   ;;  %s2679_s27 = smov 0  }
  0x11   :  { %s2681_s28 = smov 0   ;;  %s2683_s29 = smov 0  }
  0x12   :  { %s2685_s30 = smov 0   ;;  %s2687_s6 = smov 0  }
  0x13   :  { %s2689_s7 = smov 0   ;;  %s2691_s8 = smov 0  }
  0x14   :  { %s2693_s9 = smov 0   ;;  %s2695_s10 = smov 0  }
  0x15   :  { %s2697_s11 = smov 0  }
  0x16 LB: > { %3392 = sst [smem:[#allocation15_spill]] %s2543_s18  ;;  %s2757_s12 = sadd.s32 4294967295, %s2615_s11   ;;  %s2615_s11 = sphi %s2697_s11, %s24_s11   ;;  %s2611_s10 = sphi %s2695_s10, %s3464_s10   ;;  %s2607_s9 = sphi %s2693_s9, %s3473_s9   ;;  %s2603_s8 = sphi %s2691_s8, %s3472_s8   ;;  %s2599_s7 = sphi %s2689_s7, %s3459_s7   ;;  %s2595_s6 = sphi %s2687_s6, %s3471_s6   ;;  %s2591_s30 = sphi %s2685_s30, %s3470_s30   ;;  %s2587_s29 = sphi %s2683_s29, %s3458_s29   ;;  %s2583_s28 = sphi %s2681_s28, %s3469_s28   ;;  %s2579_s27 = sphi %s2679_s27, %s3468_s27   ;;  %s2575_s26 = sphi %s2677_s26, %s3456_s26   ;;  %s2571_s25 = sphi %s2675_s25, %s3455_s25   ;;  %s2567_s24 = sphi %s2673_s24, %s3454_s24   ;;  %s2563_s23 = sphi %s2671_s23, %s3467_s23   ;;  %s2559_s22 = sphi %s2669_s22, %s3453_s22   ;;  %s2555_s21 = sphi %s2667_s21, %s3452_s21   ;;  %s2551_s20 = sphi %s2665_s20, %s3465_s20   ;;  %s2547_s19 = sphi %s2663_s19, %s3463_s19   ;;  %s2543_s18 = sphi %s2661_s18, %s3461_s18  }
  0x17   : > { %3393 = sst [smem:[#allocation16_spill]] %s2555_s21  ;;  %s36_s13 = sadd.s32 1, %s2603_s8 }
  0x18   : > { %3394 = sst [smem:[#allocation17_spill]] %s2559_s22  ;;  %p37_p0 = scmp.ge.s32.totalorder %s36_s13, 2 }
  0x19   : > { %3395 = sst [smem:[#allocation18_spill]] %s2563_s23  ;;  %s39_s14 = sadd.s32 1, %s2607_s9 }
  0x1a   : > { %3396 = sst [smem:[#allocation19_spill]] %s2571_s25  ;;  %p3376_p1 = scmp.eq.s32.totalorder %s2615_s11, 0 }
  0x1b   : > { %3397 = sst [smem:[#allocation20_spill]] %s2575_s26  ;;  %p3373_p2 = scmp.eq.s32.totalorder %s2757_s12, 0 }
  0x1c   : > { %3398 = sst [smem:[#allocation21_spill]] %s2587_s29  ;;  %s3475_s13 = smov (%p37_p0, %s36_s13), 0 }
  0x1d   : > { %3399 = sst [smem:[#allocation22_spill]] %s2591_s30  ;;  %s3477_s14 = smov (!%p37_p0, %s39_s14), %s2607_s9 }
  0x1e   : > { %3400 = sst [smem:[#allocation23_spill]] %s2595_s6  ;;  %p73_p3 = scmp.eq.s32.totalorder %s2607_s9, 0 }
  0x1f   : > { %3401 = sst [smem:[#allocation24_spill]] %s2599_s7  ;;  %s80_s15 = sadd.s32 1, %s2575_s26 }
  0x20   : > { %3402 = sst [smem:[#allocation25_spill]] %s2611_s10  ;;  %p41_p4 = scmp.ge.s32.totalorder %s3477_s14, 2 }
  0x21   : > { %3403 = sst [smem:[#allocation26_spill]] %s3475_s13  ;;  %p87_p5 = scmp.ne.s32.totalorder %s2575_s26, %s2571_s25 }
  0x22   : > { %s74_s16 = scalar_select %p73_p3, %s2603_s8, 0 }
  0x23   : > { %s2777_s17 = scalar_select %p41_p4, 0, %s3477_s14  }
  0x24   : > { %p2781_p6 = por %p87_p5, %p3376_p1  ;;  %p93_p7 = scmp.ne.s32.totalorder %s2571_s25, %s2567_s24 }
  0x25   : > { %3404 = sst [smem:[#allocation27_spill]] %s2777_s17  ;;  %p75_p8 = scmp.eq.s32.totalorder %s2777_s17, 0 }
  0x26   : > { %p2790_p9 = por %p93_p7, %p3373_p2  ;;  %p2071_p10 = scmp.lt.s32.totalorder %s2615_s11, 8 }
  0x27   : > { %s76_s2 = scalar_select %p75_p8, %s3475_s13, 0 }
  0x28   : > { %s3406_s7 = scalar_select %p2790_p9, 1, 0 }
  0x29   : > { %s251_s4 = sand.u32 1, %s2615_s11   ;;  %s77_s30 = ssub.s32 %s74_s16, %s76_s2 }
  0x2a   : > { %3407 = sst [smem:[#allocation28_spill]] %s3406_s7  ;;  %p78_p11 = scmp.eq.s32.totalorder %s77_s30, 0 }
  0x2b   : > { %s253_s6 = sand.u32 1, %s2575_s26   ;;  %s1753_s21 = sshll.u32 %s74_s16, 6 }
  0x2c   : > { %s1752_s3 = sshll.u32 %s253_s6, 7  ;;  %s3409_s1 = sld [smem:[#allocation33_spill]] }
  0x2d   : > { %s2799_s22 = scalar_select %p78_p11, %s2575_s26, %s80_s15  }
  0x2e   : > { %s255_s25 = scalar_lea.vmem [#allocation7], %s1752_s3  ;;  %p2808_p12 = pnand %p2071_p10, %p2781_p6 }
  0x2f   : > { %3408 = sst [smem:[#allocation29_spill]] %s2799_s22  ;;  %s263_s18 = sshll.u32 %s255_s25, 4  ;;  %s264_s18 = int_to_ptr.vmem [resolvable:$true] %s263_s18 }
  0x30   : > { %s2812_s2 = scalar_lea.sflag [#allocation8], %s251_s4  ;;  %p2341_p13 = pneg %p2808_p12 }
  0x31   : > { %s2352_s30 = scalar_lea.vmem %s264_s18, 2048  ;;  %s2617_s0 = smov [#allocation7]  }
  0x32   : > { %s262_s24 = scalar_lea.hbm %s3409_s1, %s1753_s21  ;;  %p2353_p0 = scmp.ne.s32.totalorder %s264_s18, %s2352_s30 }
  0x33   : > { %s2357_s21 = sshll.u32 %s2617_s0, 4  ;;  %s2358_s21 = int_to_ptr.vmem [resolvable:$false] %s2357_s21 }
  0x34   : > { %p2355_p3 = pnand %p2353_p0, %p2341_p13  ;;  %s2359_s3 = scalar_lea.vmem %s2358_s21, 4096 }
  0x35   : > { %p2360_p7 = scmp.lt.s32.totalorder %s264_s18, %s2358_s21  ;;  %p2361_p8 = scmp.lt.s32.totalorder %s2359_s3, %s2352_s30 }
  0x36   : > { %p2356_p5 = pneg %p2355_p3 }
  0x37   : > { %p2362_p6 = por %p2361_p8, %p2360_p7 }
  0x39   : > { %p2363_p11 = pnand %p2362_p6, %p2356_p5 }
  0x3b   : > { %2366 = shalt.err (!%p2363_p11)
}
  0x3c   : > { %s3374_s5 = smov 128   ;;  %s2619_s4 = smov 64  }
  0x3d   : > { %s2620_s23 = smov 4   ;;  %p1759_p13 = scmp.ge.s32.totalorder %s2615_s11, 1 }
  0x3e   : > { %2063 = dma.hbm_to_vmem [thread:$0]  (!%p2808_p12), %s262_s24, 2048, %s264_s18, %s2812_s2, %s3374_s5, %s2619_s4, %s2620_s23  }
  0x3f   : > { %p313_p0 = scmp.lt.s32.totalorder %s2615_s11, 9  ;;  %s1745_s6 = sadd.s32 4294967294, %s2615_s11  }
  0x40   : > { %s43_s15 = sadd.s32 1, %s2611_s10  ;;  %s50_s16 = sadd.s32 1, %s2587_s29 }
  0x41   : > { %p2822_p3 = pnand %p1759_p13, %p313_p0  ;;  %s3479_s15 = smov (!%p41_p4, %s43_s15), %s2611_s10 }
  0x42   : > { %p57_p5 = scmp.ne.s32.totalorder %s2587_s29, %s2583_s28  ;;  %p63_p7 = scmp.ne.s32.totalorder %s2583_s28, %s2579_s27 }
  0x43   : > { %p45_p12 = scmp.ge.s32.totalorder %s3479_s15, 2  ;;  %s3412_s18 = sld [smem:[#allocation15_spill]] }
  0x44   : > { %s133_s7 = ssub.s32 %s2603_s8, %s3475_s13  ;;  %p2840_p8 = por %p3376_p1, %p57_p5 }
  0x45   : > { %p2846_p6 = por %p3373_p2, %p63_p7  ;;  %s3481_s15 = smov (%p45_p12, %s3479_s15), 0 }
  0x46   : > { %3415 = sst [smem:[#allocation30_spill]] %s3481_s15  ;;  %s134_s27 = ssub.s32 %s2607_s9, %s2777_s17 }
  0x47   : > { %s192_s30 = sadd.s32 1, %s2551_s20  ;;  %s47_s0 = ssub.s32 %s2611_s10, %s3481_s15 }
  0x48   : > { %s2857_s21 = sor.u32 %s134_s27, %s133_s7  ;;  %p48_p4 = scmp.eq.s32.totalorder %s47_s0, 0 }
  0x49   : > { %s189_s3 = sor.u32 %s134_s27, %s47_s0  ;;  %p202_p13 = scmp.ne.s32.totalorder %s2551_s20, %s2547_s19 }
  0x4a   : > { %s2863_s4 = scalar_select %p48_p4, %s2587_s29, %s50_s16  }
  0x4b   : > { %p190_p0 = scmp.eq.s32.totalorder %s189_s3, 0  ;;  %p203_p5 = scmp.eq.s32.totalorder %s2757_s12, 7 }
  0x4c   : > { %3416 = sst [smem:[#allocation31_spill]] %s2863_s4  ;;  %p208_p7 = scmp.ne.s32.totalorder %s2547_s19, %s3412_s18 }
  0x4d   : > { %p209_p12 = scmp.eq.s32.totalorder %s1745_s6, 7  ;;  %p2871_p2 = por %p203_p5, %p202_p13 }
  0x4e   : > { %s2869_s23 = scalar_select %p190_p0, %s2551_s20, %s192_s30  }
  0x4f   : > { %s3417_s5 = scalar_select %p2871_p2, 1, 0 }
  0x50   : > { %p2875_p1 = por %p209_p12, %p208_p7  ;;  %s229_s27 = sand.u32 1, %s2587_s29  }
  0x51   : > { %s1869_s0 = sshll.u32 %s2611_s10, 11  ;;  %s1748_s1 = sshll.u32 %s229_s27, 7 }
  0x52   : > { %s3418_s7 = scalar_select %p2875_p1, 1, 0 }
  0x53   : > { %s3419_s17 = sld [smem:[#allocation32_spill]]  ;;  %s233_s13 = scalar_lea.vmem [#allocation4], %s1748_s1 }
  0x54   : > { %s241_s18 = sshll.u32 %s233_s13, 4  ;;  %p2888_p4 = pnand %p2071_p10, %p2840_p8  ;;  %s242_s18 = int_to_ptr.vmem [resolvable:$true] %s241_s18 }
  0x55   : > { %s230_s30 = scalar_lea.sflag [#allocation5], %s229_s27  ;;  %s2380_s4 = scalar_lea.vmem %s242_s18, 2048 }
  0x56   : > { %p2369_p13 = pneg %p2888_p4  ;;  %p2381_p0 = scmp.ne.s32.totalorder %s242_s18, %s2380_s4 }
  0x57   : > { %s2621_s10 = smov [#allocation4]  }
  0x58   : > { %p2383_p5 = pnand %p2381_p0, %p2369_p13  ;;  %s2385_s15 = sshll.u32 %s2621_s10, 4  ;;  %s2386_s15 = int_to_ptr.vmem [resolvable:$false] %s2385_s15 }
  0x59   : > { %s240_s3 = scalar_lea.hbm %s3419_s17, %s1869_s0  ;;  %s2387_s1 = scalar_lea.vmem %s2386_s15, 4096 }
  0x5a   : > { %p2384_p7 = pneg %p2383_p5  ;;  %p2388_p12 = scmp.lt.s32.totalorder %s242_s18, %s2386_s15 }
  0x5b   : > { %p2389_p11 = scmp.lt.s32.totalorder %s2387_s1, %s2380_s4 }
  0x5d   : > { %p2390_p1 = por %p2389_p11, %p2388_p12 }
  0x5f   : > { %p2391_p8 = pnand %p2390_p1, %p2384_p7 }
  0x61   : > { %2394 = shalt.err (!%p2391_p8)
}
  0x62   : > { %s3382_s13 = smov 8   ;;  %s3421_s17 = smov 128  }
  0x63   : > { %s3422_s24 = sld [smem:[#allocation18_spill]]  ;;  %p3425_p1 = scmp.eq.s32.totalorder %s2857_s21, 0 }
  0x64   : > { %s3423_s27 = sld [smem:[#allocation17_spill]]  ;;  %s1756_s6 = sshll.u32 %s2607_s9, 1 }
  0x65   : > { %s3424_s0 = sld [smem:[#allocation16_spill]]  ;;  %p3426_p0 = scmp.eq.s32.totalorder %s2615_s11, 0 }
  0x66   : > { %2060 = dma.hbm_to_vmem [thread:$0]  (!%p2888_p4), %s240_s3, 2048, %s242_s18, %s230_s30, %s3421_s17, %s3421_s17, %s3382_s13  }
  0x67   : > { %p3427_p7 = scmp.eq.s32.totalorder %s2757_s12, 0  ;;  %s1870_s29 = sshll.u32 %s2603_s8, 6 }
  0x68   : > { %s294_s22 = sadd.s32 %s1870_s29, %s1756_s6  ;;  %s3429_s13 = sld [smem:[#allocation35_spill]] }
  0x69   : > { %s138_s10 = sadd.s32 1, %s3422_s24  ;;  %s285_s16 = sand.u32 1, %s3422_s24  }
  0x6a   : > { %s2903_s4 = scalar_select %p3425_p1, %s3422_s24, %s138_s10  }
  0x6b   : > { %p145_p11 = scmp.ne.s32.totalorder %s3422_s24, %s3423_s27  ;;  %p151_p13 = scmp.ne.s32.totalorder %s3423_s27, %s3424_s0 }
  0x6c   : > { %s1754_s1 = sshll.u32 %s285_s16, 7  ;;  %s1758_s3 = sshll.u32 %s294_s22, 6 }
  0x6d   : > { %p147_p5 = por %p145_p11, %p3426_p0  ;;  %p2915_p12 = por %p151_p13, %p3427_p7 }
  0x6e   : > { %s287_s18 = scalar_lea.vmem [#allocation9], %s1754_s1  ;;  %s296_s26 = scalar_lea.hbm %s3429_s13, %s1758_s3 }
  0x6f   : > { %s3428_s15 = scalar_select %p2915_p12, 1, 0 }
  0x70   : > { %s297_s21 = sshll.u32 %s287_s18, 4  ;;  %p2925_p4 = pnand %p2071_p10, %p147_p5  ;;  %s298_s21 = int_to_ptr.vmem [resolvable:$true] %s297_s21 }
  0x71   : > { %s2408_s27 = scalar_lea.vmem %s298_s21, 2048  ;;  %s2623_s22 = smov [#allocation9]  }
  0x72   : > { %p2397_p8 = pneg %p2925_p4  ;;  %p2409_p1 = scmp.ne.s32.totalorder %s298_s21, %s2408_s27 }
  0x73   : > { %s2413_s29 = sshll.u32 %s2623_s22, 4  ;;  %s2414_s29 = int_to_ptr.vmem [resolvable:$false] %s2413_s29 }
  0x74   : > { %p2411_p11 = pnand %p2409_p1, %p2397_p8  ;;  %s2415_s0 = scalar_lea.vmem %s2414_s29, 4096 }
  0x75   : > { %p2416_p0 = scmp.lt.s32.totalorder %s298_s21, %s2414_s29  ;;  %p2417_p7 = scmp.lt.s32.totalorder %s2415_s0, %s2408_s27 }
  0x76   : > { %p2412_p13 = pneg %p2411_p11 }
  0x77   : > { %p2418_p2 = por %p2417_p7, %p2416_p0 }
  0x79   : > { %p2419_p12 = pnand %p2418_p2, %p2412_p13 }
  0x7b   : > { %2422 = shalt.err (!%p2419_p12)
}
  0x7c   : > { %s2624_s13 = smov 256   ;;  %s3431_s16 = smov 8  }
  0x7d   : > { %2066 = dma.hbm_to_vmem [thread:$0]  (!%p2925_p4), %s296_s26, 2048, %s298_s21, %s2812_s2, %s2624_s13, %s3421_s17, %s3431_s16  }
  0x7e   : > { %317 = sbr.rel (%p2822_p3) target bundleno = 813 (0x32d), region = 40  ;;  %s319_s6 = sand.u32 (!%p2822_p3), 1, %s2583_s28  }
  0x7f   : > { %s1760_s1 = sshll.u32 (!%p2822_p3), %s319_s6, 7  ;;  %s320_s3 = scalar_lea.sflag (!%p2822_p3), [#allocation5], %s319_s6 }
  0x80   : > { %s2939_s18 = scalar_lea.vmem (!%p2822_p3), [#allocation4], %s1760_s1 }
  0x83   : > { %2526 = dma.done.wait (%p2846_p6), %s320_s3, 2048  }
  0x84   : > { %2528 = vsyncadd (%p2846_p6), %s320_s3, 4294965248  ;;  %s3432_s30 = sld [smem:[#allocation19_spill]]  ;;  %s328_s24 = sand.u32 1, %s2757_s12  }
  0x85   : > { %s329_s25 = scalar_lea.sflag [#allocation8], %s328_s24 }
  0x8a   : > { %s330_s26 = sand.u32 1, %s3432_s30  }
  0x8b   : > { %s1761_s2 = sshll.u32 %s330_s26, 7 }
  0x8c   : > { %s2947_s17 = scalar_lea.vmem [#allocation7], %s1761_s2 }
  0x8d   : > { %2530 = dma.done.wait (%p2790_p9), %s329_s25, 2048  }
  0x8e   : > { %2532 = vsyncadd (%p2790_p9), %s329_s25, 4294965248  ;;  %s3434_s21 = sld [smem:[#allocation17_spill]]  ;;  %p3435_p2 = scmp.ne.s32.totalorder %s3428_s15, 0 }
  0x94   : > { %s339_s27 = sand.u32 1, %s3434_s21  }
  0x95   : > { %s1762_s22 = sshll.u32 %s339_s27, 7 }
  0x96   : > { %s2954_s14 = scalar_lea.vmem [#allocation9], %s1762_s22 }
  0x97   : > { %2534 = dma.done.wait (%p3435_p2), %s329_s25, 2048  }
  0x98   : > { %2536 = vsyncadd (%p3435_p2), %s329_s25, 4294965248  ;;  %s3436_s12 = sld [smem:[#allocation23_spill]]  ;;  %s384_s0 = sand.u32 1, %s2547_s19  }
  0x99   : > { %s3437_s29 = sld [smem:[#allocation22_spill]]  ;;  %s1763_s13 = sshll.u32 %s384_s0, 7 }
  0x9a   : > { %s3438_s3 = sld [smem:[#allocation36_spill]]  ;;  %s2982_s25 = scalar_lea.vmem [#allocation10], %s1763_s13 }
  0x9b   : > { %s3439_s26 = sld [smem:[#allocation34_spill]] }
  0x9e   : > { %p390_p10 = scmp.eq.s32.totalorder %s3436_s12, 0  ;;  %s2965_s16 = sshll.u32 %s3436_s12, 1 }
  0x9f   : > { %p400_p9 = scmp.lt.s32.totalorder %s2965_s16, 3  ;;  %p1765_p6 = scmp.ne.s32.totalorder %s3436_s12, 0 }
  0xa0   : > { %s3483_s29 = smov (!%p390_p10, %s3437_s29), 0 }
  0xa1   : > { %s2970_s6 = scalar_select %p400_p9, %s2965_s16, 3 }
  0xa2   : > { %p392_p3 = scmp.lt.s32.totalorder %s3483_s29, 1  ;;  %410 = sbr.rel (%p1765_p6) target bundleno = 467 (0x1d3), region = 56 }
  0xa3   : > { %s402_s30 = scalar_lea.vmem %s3438_s3, %s2970_s6 }
  0xa4   : > { %s3485_s29 = smov (!%p392_p3, %s3483_s29), 1 }
  0xa5   : > { %s394_s2 = scalar_lea.vmem %s3439_s26, %s3485_s29 }
  0xa7   : > { %v2235_v0 = vld [vmem:[%s2947_s17 + $0x78] sm:$0xff]   ;;  %v2237_v2 = vld [vmem:[%s2947_s17 + $0x70] sm:$0xff]   ;;  %v2239_v4 = vld [vmem:[%s2947_s17 + $0x68] sm:$0xff]  }
  0xa8   : > { %v2236_v1 = vld [vmem:[%s2947_s17 + $0x38] sm:$0xff]   ;;  %1953 = vmatprep.subr.bf16.mxu0 %v2235_v0  ;;  %2017 = vmatprep.subr.bf16.mxu1 %v2235_v0  ;;  %v2238_v3 = vld [vmem:[%s2947_s17 + $0x30] sm:$0xff]   ;;  %v2240_v5 = vld [vmem:[%s2947_s17 + $0x28] sm:$0xff]  }
  0xa9   : > { %1954 = vmatpush3.bf16.msra.mxu0 %v2236_v1  ;;  %2025 = vmatpush3.bf16.msra.mxu1 %v2236_v1  ;;  %v2241_v6 = vld [vmem:[%s2947_s17 + $0x60] sm:$0xff]   ;;  %v2243_v8 = vld [vmem:[%s2947_s17 + $0x58] sm:$0xff]   ;;  %v2245_v10 = vld [vmem:[%s2947_s17 + $0x50] sm:$0xff]  }
  0xaa   : > { %1955 = vmatprep.subr.bf16.mxu0 %v2237_v2  ;;  %2018 = vmatprep.subr.bf16.mxu1 %v2237_v2  ;;  %v2242_v7 = vld [vmem:[%s2947_s17 + $0x20] sm:$0xff]   ;;  %v2244_v9 = vld [vmem:[%s2947_s17 + $0x18] sm:$0xff]   ;;  %v2246_v13 = vld [vmem:[%s2947_s17 + $0x10] sm:$0xff]  }
  0xab   : > { %v2253_v11 = vld [vmem:[%s2939_s18 + $0x4] ss:$8 sps:$4 sm:$0xff]   ;;  %v2251_v18 = vld [vmem:[%s2939_s18] ss:$8 sps:$4 sm:$0xff]   ;;  %v2257_v20 = vld [vmem:[%s2939_s18 + $0x14] ss:$8 sps:$4 sm:$0xff]  }
  0xac   : > { %v2256_v12 = vld [vmem:[%s2939_s18 + $0x44] ss:$8 sps:$4 sm:$0xff]   ;;  %674 = vmatprep.mubr.bf16.mxu0 %v2253_v11  ;;  %v2254_v19 = vld [vmem:[%s2939_s18 + $0x40] ss:$8 sps:$4 sm:$0xff]   ;;  %v2259_v21 = vld [vmem:[%s2939_s18 + $0x54] ss:$8 sps:$4 sm:$0xff]  }
  0xad   : > { %1956 = vmatpush3.bf16.msra.mxu0 %v2238_v3  ;;  %2026 = vmatpush3.bf16.msra.mxu1 %v2238_v3  ;;  %v2247_v14 = vld [vmem:[%s2947_s17 + $0x48] sm:$0xff]   ;;  %v2249_v16 = vld [vmem:[%s2947_s17 + $0x40] sm:$0xff]   ;;  %v2261_v22 = vld [vmem:[%s2939_s18 + $0x10] ss:$8 sps:$4 sm:$0xff]  }
  0xae   : > { %1957 = vmatprep.subr.bf16.mxu0 %v2239_v4  ;;  %2019 = vmatprep.subr.bf16.mxu1 %v2239_v4  ;;  %v2248_v15 = vld [vmem:[%s2947_s17 + $0x8] sm:$0xff]   ;;  %v2250_v17 = vld [vmem:[%s2947_s17] sm:$0xff]   ;;  %v2262_v23 = vld [vmem:[%s2939_s18 + $0x50] ss:$8 sps:$4 sm:$0xff]  }
  0xaf   : > { %706 = vmatprep.mubr.bf16.mxu1 %v2256_v12  ;;  %v2263_v24 = vld [vmem:[%s2939_s18 + $0x24] ss:$8 sps:$4 sm:$0xff]   ;;  %v2267_v26 = vld [vmem:[%s2939_s18 + $0x20] ss:$8 sps:$4 sm:$0xff]   ;;  %v2269_v28 = vld [vmem:[%s2939_s18 + $0x34] ss:$8 sps:$4 sm:$0xff]  }
  0xb0   : > { %v2265_v25 = vld [vmem:[%s2939_s18 + $0x64] ss:$8 sps:$4 sm:$0xff]   ;;  %v2268_v27 = vld [vmem:[%s2939_s18 + $0x60] ss:$8 sps:$4 sm:$0xff]   ;;  %v2271_v29 = vld [vmem:[%s2939_s18 + $0x74] ss:$8 sps:$4 sm:$0xff]  }
  0xb1   : > { %1958 = vmatpush3.bf16.msra.mxu0 %v2240_v5  ;;  %2027 = vmatpush3.bf16.msra.mxu1 %v2240_v5  ;;  %v2273_v30 = vld [vmem:[%s2939_s18 + $0x30] ss:$8 sps:$4 sm:$0xff]   ;;  %v3022_v34 = vld [vmem:[%s394_s2] ss:$0 sm:$0xff] }
  0xb2   : > { %1959 = vmatprep.subr.bf16.mxu0 %v2241_v6  ;;  %2020 = vmatprep.subr.bf16.mxu1 %v2241_v6  ;;  %v2274_v31 = vld [vmem:[%s2939_s18 + $0x70] ss:$8 sps:$4 sm:$0xff]   ;;  %s3441_s18 = sld [smem:[#allocation22_spill]] }
  0xb5   : > { %1960 = vmatpush3.bf16.msra.mxu0 %v2242_v7  ;;  %2028 = vmatpush3.bf16.msra.mxu1 %v2242_v7 }
  0xb6   : > { %1961 = vmatprep.subr.bf16.mxu0 %v2243_v8  ;;  %2021 = vmatprep.subr.bf16.mxu1 %v2243_v8 }
  0xb8   : > { %s1887_s22 = sshll.u32 %s3441_s18, 6 }
  0xb9   : > { %1962 = vmatpush3.bf16.msra.mxu0 %v2244_v9  ;;  %2029 = vmatpush3.bf16.msra.mxu1 %v2244_v9  ;;  %s3137_s12 = scalar_lea.vmem [#allocation2], %s1887_s22 }
  0xba   : > { %1963 = vmatprep.subr.bf16.mxu0 %v2245_v10  ;;  %2022 = vmatprep.subr.bf16.mxu1 %v2245_v10 }
  0xbd   : > { %1964 = vmatpush3.bf16.msra.mxu0 %v2246_v13  ;;  %2030 = vmatpush3.bf16.msra.mxu1 %v2246_v13 }
  0xbe   : > { %1965 = vmatprep.subr.bf16.mxu0 %v2247_v14  ;;  %2023 = vmatprep.subr.bf16.mxu1 %v2247_v14 }
  0xc1   : > { %1966 = vmatpush3.bf16.msra.mxu0 %v2248_v15  ;;  %2031 = vmatpush3.bf16.msra.mxu1 %v2248_v15 }
  0xc2   : > { %1967 = vmatprep.subr.bf16.mxu0 %v2249_v16  ;;  %2024 = vmatprep.subr.bf16.mxu1 %v2249_v16 }
  0xc5   : > { %1968 = vmatpush3.bf16.msra.mxu0 %v2250_v17  ;;  %2032 = vmatpush3.bf16.msra.mxu1 %v2250_v17 }
  0xc8   : > { %675 = vmatmul.mubr.bf16.vlgmr.msra.gmra.mxu0 %v2251_v18  ;;  %707 = vmatmul.mubr.bf16.vlgmr.msra.gmra.mxu1 %v2254_v19 }
  0xc9   : > { %682 = vmatprep.mubr.bf16.mxu0 %v2257_v20  ;;  %714 = vmatprep.mubr.bf16.mxu1 %v2259_v21 }
  0xd0   : > { %683 = vmatmul.mubr.bf16.gmra.mxu0 %v2261_v22  ;;  %715 = vmatmul.mubr.bf16.gmra.mxu1 %v2262_v23 }
  0xd1   : > { %690 = vmatprep.mubr.bf16.mxu0 %v2263_v24  ;;  %722 = vmatprep.mubr.bf16.mxu1 %v2265_v25 }
  0xd8   : > { %691 = vmatmul.mubr.bf16.gmra.mxu0 %v2267_v26  ;;  %723 = vmatmul.mubr.bf16.gmra.mxu1 %v2268_v27 }
  0xd9   : > { %698 = vmatprep.mubr.bf16.mxu0 %v2269_v28  ;;  %730 = vmatprep.mubr.bf16.mxu1 %v2271_v29 }
  0xe0   : > { %699 = vmatmul.mubr.bf16.gmra.mxu0 %v2273_v30  ;;  %731 = vmatmul.mubr.bf16.gmra.mxu1 %v2274_v31 }
 0x188   : > { %v1969_v32 = vpop.f32.mrf.mxu0  ;;  %v1993_v33 = vpop.f32.mrf.mxu1 }
 0x18a   : > { %v1970_v35 = vpop.f32.mrf.mxu0  ;;  %v1994_v36 = vpop.f32.mrf.mxu1 }
 0x18b   : > { %v1971_v37 = vadd.f32 %v1970_v35, %v1969_v32  ;;  %v1995_v38 = vadd.f32 %v1994_v36, %v1993_v33 }
 0x18c   : > { %v1972_v39 = vpop.f32.mrf.mxu0  ;;  %v1996_v40 = vpop.f32.mrf.mxu1 }
 0x18d   : > { %v3025_v41 = vadd.f32 %v1971_v37, %v3022_v34  ;;  %v3028_v42 = vadd.f32 %v1995_v38, %v3022_v34 }
 0x18e   : > { %v1973_v43 = vpop.f32.mrf.mxu0  ;;  %v1997_v44 = vpop.f32.mrf.mxu1 }
 0x18f   : > { %v739_v45 = vmul.f32 %v3025_v41, %v3025_v41  ;;  %v747_v46 = vmul.f32 %v3028_v42, %v3028_v42  ;;  %v1974_v47 = vadd.f32 %v1973_v43, %v1972_v39  ;;  %v1998_v48 = vadd.f32 %v1997_v44, %v1996_v40 }
 0x190   : > { %v1975_v49 = vpop.f32.mrf.mxu0  ;;  %v1999_v50 = vpop.f32.mrf.mxu1 }
 0x191   : > { %v755_v51 = vmul.f32 %v739_v45, %v3025_v41  ;;  %v763_v52 = vmul.f32 %v747_v46, %v3028_v42  ;;  %v3037_v53 = vadd.f32 %v1974_v47, %v3022_v34  ;;  %v3040_v54 = vadd.f32 %v1998_v48, %v3022_v34 }
 0x192   : > { %v1976_v55 = vpop.f32.mrf.mxu0  ;;  %v2000_v56 = vpop.f32.mrf.mxu1 }
 0x193   : > { %v771_v57 = vmul.f32 0.044715, %v755_v51  ;;  %v779_v58 = vmul.f32 0.044715, %v763_v52  ;;  %v740_v59 = vmul.f32 %v3037_v53, %v3037_v53  ;;  %v748_v60 = vmul.f32 %v3040_v54, %v3040_v54 }
 0x194   : > { %v1977_v61 = vadd.f32 %v1976_v55, %v1975_v49  ;;  %v2001_v62 = vadd.f32 %v2000_v56, %v1999_v50  ;;  %v1978_v63 = vpop.f32.mrf.mxu0  ;;  %v2002_v0 = vpop.f32.mrf.mxu1 }
 0x195   : > { %v787_v1 = vadd.f32 %v771_v57, %v3025_v41  ;;  %v795_v2 = vadd.f32 %v779_v58, %v3028_v42  ;;  %v756_v3 = vmul.f32 %v740_v59, %v3037_v53  ;;  %v764_v4 = vmul.f32 %v748_v60, %v3040_v54 }
 0x196   : > { %v3051_v5 = vadd.f32 %v1977_v61, %v3022_v34  ;;  %v3054_v6 = vadd.f32 %v2001_v62, %v3022_v34  ;;  %v1979_v7 = vpop.f32.mrf.mxu0  ;;  %v2003_v8 = vpop.f32.mrf.mxu1 }
 0x197   : > { %v803_v9 = vmul.f32 0.7978846, %v787_v1  ;;  %v811_v10 = vmul.f32 0.7978846, %v795_v2  ;;  %v772_v11 = vmul.f32 0.044715, %v756_v3  ;;  %v1980_v12 = vadd.f32 %v1979_v7, %v1978_v63 }
 0x198   : > { %v780_v13 = vmul.f32 0.044715, %v764_v4  ;;  %v741_v14 = vmul.f32 %v3051_v5, %v3051_v5  ;;  %v749_v15 = vmul.f32 %v3054_v6, %v3054_v6  ;;  %v2004_v16 = vadd.f32 %v2003_v8, %v2002_v0  ;;  %v1981_v17 = vpop.f32.mrf.mxu0  ;;  %v2005_v18 = vpop.f32.mrf.mxu1 }
 0x199   : > { %2275 = vtanh.f32 %v803_v9  ;;  %v788_v19 = vadd.f32 %v772_v11, %v3037_v53  ;;  %v3062_v20 = vadd.f32 %v1980_v12, %v3022_v34 }
 0x19a   : > { %2277 = vtanh.f32 %v811_v10  ;;  %v796_v21 = vadd.f32 %v780_v13, %v3040_v54  ;;  %v757_v22 = vmul.f32 %v741_v14, %v3051_v5  ;;  %v765_v23 = vmul.f32 %v749_v15, %v3054_v6  ;;  %v1982_v24 = vpop.f32.mrf.mxu0  ;;  %v2006_v25 = vpop.f32.mrf.mxu1 }
 0x19b   : > { %v804_v26 = vmul.f32 0.7978846, %v788_v19  ;;  %v742_v27 = vmul.f32 %v3062_v20, %v3062_v20  ;;  %v3070_v28 = vadd.f32 %v2004_v16, %v3022_v34  ;;  %v1983_v29 = vadd.f32 %v1982_v24, %v1981_v17 }
 0x19c   : > { %v812_v30 = vmul.f32 0.7978846, %v796_v21  ;;  %v773_v31 = vmul.f32 0.044715, %v757_v22  ;;  %v781_v32 = vmul.f32 0.044715, %v765_v23  ;;  %v2007_v33 = vadd.f32 %v2006_v25, %v2005_v18  ;;  %v1984_v35 = vpop.f32.mrf.mxu0  ;;  %v2008_v36 = vpop.f32.mrf.mxu1 }
 0x19d   : > { %2279 = vtanh.f32 %v804_v26  ;;  %v758_v37 = vmul.f32 %v742_v27, %v3062_v20  ;;  %v750_v38 = vmul.f32 %v3070_v28, %v3070_v28  ;;  %v3076_v39 = vadd.f32 %v1983_v29, %v3022_v34 }
 0x19e   : > { %2281 = vtanh.f32 %v812_v30  ;;  %v789_v40 = vadd.f32 %v773_v31, %v3051_v5  ;;  %v797_v43 = vadd.f32 %v781_v32, %v3054_v6  ;;  %v3081_v44 = vadd.f32 %v2007_v33, %v3022_v34  ;;  %v1985_v45 = vpop.f32.mrf.mxu0  ;;  %v2009_v46 = vpop.f32.mrf.mxu1 }
 0x19f   : > { %v774_v47 = vmul.f32 0.044715, %v758_v37  ;;  %v766_v48 = vmul.f32 %v750_v38, %v3070_v28  ;;  %v743_v49 = vmul.f32 %v3076_v39, %v3076_v39  ;;  %v1986_v50 = vadd.f32 %v1985_v45, %v1984_v35 }
 0x1a0   : > { %v805_v51 = vmul.f32 0.7978846, %v789_v40  ;;  %v813_v52 = vmul.f32 0.7978846, %v797_v43  ;;  %v751_v55 = vmul.f32 %v3081_v44, %v3081_v44  ;;  %v2010_v56 = vadd.f32 %v2009_v46, %v2008_v36  ;;  %v1987_v57 = vpop.f32.mrf.mxu0  ;;  %v2011_v58 = vpop.f32.mrf.mxu1 }
 0x1a1   : > { %v790_v59 = vadd.f32 %v774_v47, %v3062_v20  ;;  %v782_v60 = vmul.f32 0.044715, %v766_v48  ;;  %v759_v61 = vmul.f32 %v743_v49, %v3076_v39  ;;  %v3091_v62 = vadd.f32 %v1986_v50, %v3022_v34 }
 0x1a2   : > { %2283 = vtanh.f32 %v805_v51  ;;  %v767_v63 = vmul.f32 %v751_v55, %v3081_v44  ;;  %v3095_v0 = vadd.f32 %v2010_v56, %v3022_v34  ;;  %v1988_v1 = vpop.f32.mrf.mxu0  ;;  %v2012_v2 = vpop.f32.mrf.mxu1 }
 0x1a3   : > { %2285 = vtanh.f32 %v813_v52  ;;  %v806_v3 = vmul.f32 0.7978846, %v790_v59  ;;  %v798_v4 = vadd.f32 %v782_v60, %v3070_v28  ;;  %v775_v7 = vmul.f32 0.044715, %v759_v61 }
 0x1a4   : > { %v783_v8 = vmul.f32 0.044715, %v767_v63  ;;  %v744_v9 = vmul.f32 %v3091_v62, %v3091_v62  ;;  %v752_v10 = vmul.f32 %v3095_v0, %v3095_v0  ;;  %v1989_v11 = vadd.f32 %v1988_v1, %v1987_v57  ;;  %v1990_v21 = vpop.f32.mrf.mxu0  ;;  %v2014_v26 = vpop.f32.mrf.mxu1 }
 0x1a5   : > { %2287 = vtanh.f32 %v806_v3  ;;  %v814_v12 = vmul.f32 0.7978846, %v798_v4  ;;  %v791_v13 = vadd.f32 %v775_v7, %v3076_v39  ;;  %v2013_v14 = vadd.f32 %v2012_v2, %v2011_v58 }
 0x1a6   : > { %v2276_v15 = vpop.eup %2275  ;;  %v799_v16 = vadd.f32 %v783_v8, %v3081_v44  ;;  %v760_v17 = vmul.f32 %v744_v9, %v3091_v62  ;;  %v768_v18 = vmul.f32 %v752_v10, %v3095_v0  ;;  %v3107_v19 = vadd.f32 %v1989_v11, %v3022_v34  ;;  %v1991_v40 = vpop.f32.mrf.mxu0 }
 0x1a7   : > { %v2278_v22 = vpop.eup %2277  ;;  %v835_v23 = vadd.f32 1.0, %v2276_v15  ;;  %2289 = vtanh.f32 %v814_v12  ;;  %v807_v24 = vmul.f32 0.7978846, %v791_v13  ;;  %v3110_v25 = vadd.f32 %v2013_v14, %v3022_v34  ;;  %v2015_v49 = vpop.f32.mrf.mxu1 }
 0x1a8   : > { %v843_v27 = vadd.f32 1.0, %v2278_v22  ;;  %v815_v29 = vmul.f32 0.7978846, %v799_v16  ;;  %v776_v30 = vmul.f32 0.044715, %v760_v17  ;;  %v745_v31 = vmul.f32 %v3107_v19, %v3107_v19 }
 0x1a9   : > { %v851_v32 = vmul.f32 0.5, %v835_v23  ;;  %2291 = vtanh.f32 %v807_v24  ;;  %v784_v33 = vmul.f32 0.044715, %v768_v18  ;;  %v753_v35 = vmul.f32 %v3110_v25, %v3110_v25 }
 0x1aa   : > { %v2280_v36 = vpop.eup %2279  ;;  %2293 = vtanh.f32 %v815_v29  ;;  %v792_v37 = vadd.f32 %v776_v30, %v3091_v62  ;;  %v761_v38 = vmul.f32 %v745_v31, %v3107_v19  ;;  %v859_v45 = vmul.f32 0.5, %v843_v27 }
 0x1ab   : > { %v2282_v43 = vpop.eup %2281  ;;  %v836_v46 = vadd.f32 1.0, %v2280_v36  ;;  %v800_v47 = vadd.f32 %v784_v33, %v3095_v0  ;;  %v769_v48 = vmul.f32 %v753_v35, %v3110_v25  ;;  %v867_v50 = vmul.f32 %v851_v32, %v3025_v41 }
 0x1ac   : > { %v844_v51 = vadd.f32 1.0, %v2282_v43  ;;  %v808_v52 = vmul.f32 0.7978846, %v792_v37  ;;  %v777_v55 = vmul.f32 0.044715, %v761_v38  ;;  %v1992_v59 = vadd.f32 %v1991_v40, %v1990_v21 }
 0x1ad   : > { %v852_v56 = vmul.f32 0.5, %v836_v46  ;;  %v816_v57 = vmul.f32 0.7978846, %v800_v47  ;;  %v785_v58 = vmul.f32 0.044715, %v769_v48  ;;  %v2016_v63 = vadd.f32 %v2015_v49, %v2014_v26 }
 0x1ae   : > { %v860_v60 = vmul.f32 0.5, %v844_v51  ;;  %2295 = vtanh.f32 %v808_v52  ;;  %v793_v61 = vadd.f32 %v777_v55, %v3107_v19  ;;  %v3126_v41 = vadd.f32 %v1992_v59, %v3022_v34 }
 0x1af   : > { %v2284_v1 = vpop.eup %2283  ;;  %v868_v2 = vmul.f32 %v852_v56, %v3037_v53  ;;  %2297 = vtanh.f32 %v816_v57  ;;  %v801_v3 = vadd.f32 %v785_v58, %v3110_v25  ;;  %v875_v7 = vmul.f32 %v859_v45, %v3028_v42 }
 0x1b0   : > { %v2286_v4 = vpop.eup %2285  ;;  %v876_v8 = vmul.f32 %v860_v60, %v3040_v54  ;;  %v837_v9 = vadd.f32 1.0, %v2284_v1  ;;  %v3131_v10 = vadd.f32 %v2016_v63, %v3022_v34  ;;  %v809_v13 = vmul.f32 0.7978846, %v793_v61 }
 0x1b1   : > { %v1909_v11 = vpack.c.bf16 %v868_v2, %v867_v50  ;;  %v845_v12 = vadd.f32 1.0, %v2286_v4  ;;  %v746_v53 = vmul.f32 %v3126_v41, %v3126_v41  ;;  %v817_v16 = vmul.f32 0.7978846, %v801_v3 }
 0x1b2   : > { %v2288_v14 = vpop.eup %2287  ;;  %v1929_v15 = vpack.c.bf16 %v876_v8, %v875_v7  ;;  %v754_v17 = vmul.f32 %v3131_v10, %v3131_v10  ;;  %v853_v42 = vmul.f32 0.5, %v837_v9  ;;  %2299 = vtanh.f32 %v809_v13 }
 0x1b3   : > { %1910 = vst [vmem:[%s3137_s12] sm:$0xff] %v1909_v11   ;;  %v838_v34 = vadd.f32 1.0, %v2288_v14  ;;  %v762_v54 = vmul.f32 %v746_v53, %v3126_v41  ;;  %v861_v21 = vmul.f32 0.5, %v845_v12  ;;  %2301 = vtanh.f32 %v817_v16 }
 0x1b4   : > { %v2290_v18 = vpop.eup %2289  ;;  %1949 = vst [vmem:[%s3137_s12 + $0x20] sm:$0xff] %v1929_v15   ;;  %v770_v22 = vmul.f32 %v754_v17, %v3131_v10  ;;  %v869_v31 = vmul.f32 %v853_v42, %v3051_v5 }
 0x1b5   : > { %v854_v23 = vmul.f32 0.5, %v838_v34  ;;  %v846_v24 = vadd.f32 1.0, %v2290_v18  ;;  %v778_v26 = vmul.f32 0.044715, %v762_v54  ;;  %v877_v36 = vmul.f32 %v861_v21, %v3054_v6 }
 0x1b6   : > { %v2292_v27 = vpop.eup %2291  ;;  %v786_v29 = vmul.f32 0.044715, %v770_v22 }
 0x1b7   : > { %v2294_v30 = vpop.eup %2293  ;;  %v870_v32 = vmul.f32 %v854_v23, %v3062_v20  ;;  %v862_v33 = vmul.f32 0.5, %v846_v24  ;;  %v794_v35 = vadd.f32 %v778_v26, %v3126_v41  ;;  %v839_v37 = vadd.f32 1.0, %v2292_v27 }
 0x1b8   : > { %v802_v38 = vadd.f32 %v786_v29, %v3131_v10  ;;  %v847_v45 = vadd.f32 1.0, %v2294_v30 }
 0x1b9   : > { %v1914_v40 = vpack.c.bf16 %v870_v32, %v869_v31  ;;  %v878_v43 = vmul.f32 %v862_v33, %v3070_v28  ;;  %v810_v46 = vmul.f32 0.7978846, %v794_v35  ;;  %v855_v49 = vmul.f32 0.5, %v839_v37 }
 0x1ba   : > { %v818_v47 = vmul.f32 0.7978846, %v802_v38  ;;  %v863_v6 = vmul.f32 0.5, %v847_v45 }
 0x1bb   : > { %v2296_v48 = vpop.eup %2295  ;;  %1946 = vst [vmem:[%s3137_s12 + $0x8] sm:$0xff] %v1914_v40   ;;  %v1934_v5 = vpack.c.bf16 %v878_v43, %v877_v36  ;;  %2303 = vtanh.f32 %v810_v46  ;;  %v871_v28 = vmul.f32 %v855_v49, %v3076_v39 }
 0x1bc   : > { %v2298_v20 = vpop.eup %2297  ;;  %v840_v50 = vadd.f32 1.0, %v2296_v48  ;;  %2305 = vtanh.f32 %v818_v47  ;;  %v879_v57 = vmul.f32 %v863_v6, %v3081_v44 }
 0x1bd   : > { %1950 = vst [vmem:[%s3137_s12 + $0x28] sm:$0xff] %v1934_v5   ;;  %v848_v51 = vadd.f32 1.0, %v2298_v20 }
 0x1be   : > { %v856_v52 = vmul.f32 0.5, %v840_v50 }
 0x1bf   : > { %v864_v55 = vmul.f32 0.5, %v848_v51  ;;  %v2300_v59 = vpop.eup %2299 }
 0x1c0   : > { %v872_v56 = vmul.f32 %v856_v52, %v3091_v62  ;;  %v2302_v61 = vpop.eup %2301  ;;  %v841_v1 = vadd.f32 1.0, %v2300_v59 }
 0x1c1   : > { %v880_v58 = vmul.f32 %v864_v55, %v3095_v0  ;;  %v849_v2 = vadd.f32 1.0, %v2302_v61 }
 0x1c2   : > { %v1919_v60 = vpack.c.bf16 %v872_v56, %v871_v28  ;;  %v857_v7 = vmul.f32 0.5, %v841_v1 }
 0x1c3   : > { %v1939_v63 = vpack.c.bf16 %v880_v58, %v879_v57  ;;  %v865_v8 = vmul.f32 0.5, %v849_v2 }
 0x1c4   : > { %1947 = vst [vmem:[%s3137_s12 + $0x10] sm:$0xff] %v1919_v60   ;;  %v873_v0 = vmul.f32 %v857_v7, %v3107_v19 }
 0x1c5   : > { %1951 = vst [vmem:[%s3137_s12 + $0x30] sm:$0xff] %v1939_v63   ;;  %v881_v12 = vmul.f32 %v865_v8, %v3110_v25 }
 0x1c8   : > { %v2304_v3 = vpop.eup %2303 }
 0x1c9   : > { %v2306_v4 = vpop.eup %2305  ;;  %v842_v39 = vadd.f32 1.0, %v2304_v3 }
 0x1ca   : > { %v850_v62 = vadd.f32 1.0, %v2306_v4 }
 0x1cb   : > { %v858_v9 = vmul.f32 0.5, %v842_v39 }
 0x1cc   : > { %v866_v44 = vmul.f32 0.5, %v850_v62 }
 0x1cd   : > { %v874_v11 = vmul.f32 %v858_v9, %v3126_v41 }
 0x1ce   : > { %v882_v13 = vmul.f32 %v866_v44, %v3131_v10 }
 0x1cf   : > { %v1924_v53 = vpack.c.bf16 %v874_v11, %v873_v0 }
 0x1d0   : > { %v1944_v14 = vpack.c.bf16 %v882_v13, %v881_v12 }
 0x1d1   : > { %1948 = vst [vmem:[%s3137_s12 + $0x18] sm:$0xff] %v1924_v53  }
 0x1d2   : > { %1952 = vst [vmem:[%s3137_s12 + $0x38] sm:$0xff] %v1944_v14  }
 0x1d3 PF: > { %s3442_s29 = sld [smem:[#allocation22_spill]] }
 0x1d9   : > { %p1817_p5 = scmp.ne.s32.totalorder %s3442_s29, 0 }
 0x1db   : > { %969 = sbr.rel (%p1817_p5) target bundleno = 497 (0x1f1), region = 60 }
 0x1e0   : > { %v2625_v15 = vmov 0.0  }
 0x1e1   : > { %970 = vst [vmem:[#allocation3 + $0xb0] sm:$0xff] %v2625_v15  ;;  %971 = vst [vmem:[#allocation3] sm:$0xff] %v2625_v15 }
 0x1e2   : > { %972 = vst [vmem:[#allocation3 + $0xd8] sm:$0xff] %v2625_v15  ;;  %973 = vst [vmem:[#allocation3 + $0x18] sm:$0xff] %v2625_v15 }
 0x1e3   : > { %974 = vst [vmem:[#allocation3 + $0x50] sm:$0xff] %v2625_v15  ;;  %975 = vst [vmem:[#allocation3 + $0x68] sm:$0xff] %v2625_v15 }
 0x1e4   : > { %976 = vst [vmem:[#allocation3 + $0x30] sm:$0xff] %v2625_v15  ;;  %977 = vst [vmem:[#allocation3 + $0x48] sm:$0xff] %v2625_v15 }
 0x1e5   : > { %978 = vst [vmem:[#allocation3 + $0x80] sm:$0xff] %v2625_v15  ;;  %979 = vst [vmem:[#allocation3 + $0x88] sm:$0xff] %v2625_v15 }
 0x1e6   : > { %980 = vst [vmem:[#allocation3 + $0xe8] sm:$0xff] %v2625_v15  ;;  %981 = vst [vmem:[#allocation3 + $0xb8] sm:$0xff] %v2625_v15 }
 0x1e7   : > { %982 = vst [vmem:[#allocation3 + $0x60] sm:$0xff] %v2625_v15  ;;  %983 = vst [vmem:[#allocation3 + $0xf0] sm:$0xff] %v2625_v15 }
 0x1e8   : > { %984 = vst [vmem:[#allocation3 + $0x8] sm:$0xff] %v2625_v15  ;;  %985 = vst [vmem:[#allocation3 + $0x78] sm:$0xff] %v2625_v15 }
 0x1e9   : > { %986 = vst [vmem:[#allocation3 + $0x38] sm:$0xff] %v2625_v15  ;;  %987 = vst [vmem:[#allocation3 + $0x58] sm:$0xff] %v2625_v15 }
 0x1ea   : > { %988 = vst [vmem:[#allocation3 + $0x40] sm:$0xff] %v2625_v15  ;;  %989 = vst [vmem:[#allocation3 + $0xc8] sm:$0xff] %v2625_v15 }
 0x1eb   : > { %990 = vst [vmem:[#allocation3 + $0xe0] sm:$0xff] %v2625_v15  ;;  %991 = vst [vmem:[#allocation3 + $0x90] sm:$0xff] %v2625_v15 }
 0x1ec   : > { %992 = vst [vmem:[#allocation3 + $0x70] sm:$0xff] %v2625_v15  ;;  %993 = vst [vmem:[#allocation3 + $0xc0] sm:$0xff] %v2625_v15 }
 0x1ed   : > { %994 = vst [vmem:[#allocation3 + $0xa8] sm:$0xff] %v2625_v15  ;;  %995 = vst [vmem:[#allocation3 + $0xd0] sm:$0xff] %v2625_v15 }
 0x1ee   : > { %996 = vst [vmem:[#allocation3 + $0x10] sm:$0xff] %v2625_v15  ;;  %997 = vst [vmem:[#allocation3 + $0x28] sm:$0xff] %v2625_v15 }
 0x1ef   : > { %998 = vst [vmem:[#allocation3 + $0xa0] sm:$0xff] %v2625_v15  ;;  %999 = vst [vmem:[#allocation3 + $0xf8] sm:$0xff] %v2625_v15 }
 0x1f0   : > { %1000 = vst [vmem:[#allocation3 + $0x20] sm:$0xff] %v2625_v15  ;;  %1001 = vst [vmem:[#allocation3 + $0x98] sm:$0xff] %v2625_v15 }
 0x1f1 PF: > { %s3443_s13 = sld [smem:[#allocation22_spill]]  ;;  %v2307_v19 = vld [vmem:[%s2954_s14 + $0x74] ss:$8 sps:$4 sm:$0xff]   ;;  %v2309_v25 = vld [vmem:[%s2954_s14 + $0x70] ss:$8 sps:$4 sm:$0xff]   ;;  %v2626_v41 = vmov 0  }
 0x1f2   : > { %1229 = vmatprep.mubr.bf16.mxu0 %v2626_v41  ;;  %1269 = vmatprep.mubr.bf16.mxu1 %v2626_v41  ;;  %v2310_v10 = vld [vmem:[%s2954_s14 + $0x64] ss:$8 sps:$4 sm:$0xff]   ;;  %v2312_v16 = vld [vmem:[%s2954_s14 + $0x60] ss:$8 sps:$4 sm:$0xff]   ;;  %v2313_v17 = vld [vmem:[%s2954_s14 + $0x54] ss:$8 sps:$4 sm:$0xff]  }
 0x1f3   : > { %1197 = vmatprep.subr.bf16.mxu0 %v2307_v19  ;;  %2033 = vmatprep.subr.bf16.mxu1 %v2307_v19  ;;  %v2315_v42 = vld [vmem:[%s2954_s14 + $0x50] ss:$8 sps:$4 sm:$0xff]   ;;  %v2316_v34 = vld [vmem:[%s2954_s14 + $0x44] ss:$8 sps:$4 sm:$0xff]   ;;  %v2318_v54 = vld [vmem:[%s2954_s14 + $0x40] ss:$8 sps:$4 sm:$0xff]  }
 0x1f4   : > { %1198 = vmatpush1.bf16.msra.mxu0 %v2309_v25  ;;  %2041 = vmatpush1.bf16.msra.mxu1 %v2309_v25  ;;  %v2319_v18 = vld [vmem:[%s2954_s14 + $0x34] ss:$8 sps:$4 sm:$0xff]   ;;  %v2321_v21 = vld [vmem:[%s2954_s14 + $0x30] ss:$8 sps:$4 sm:$0xff]   ;;  %v2322_v22 = vld [vmem:[%s2954_s14 + $0x24] ss:$8 sps:$4 sm:$0xff]  }
 0x1f5   : > { %1199 = vmatprep.subr.bf16.mxu0 %v2310_v10  ;;  %2034 = vmatprep.subr.bf16.mxu1 %v2310_v10  ;;  %v2324_v23 = vld [vmem:[%s2954_s14 + $0x20] ss:$8 sps:$4 sm:$0xff]   ;;  %v2325_v24 = vld [vmem:[%s2954_s14 + $0x14] ss:$8 sps:$4 sm:$0xff]   ;;  %v2327_v26 = vld [vmem:[%s2954_s14 + $0x10] ss:$8 sps:$4 sm:$0xff]  }
 0x1f6   : > { %v2328_v27 = vld [vmem:[%s2954_s14 + $0x4] ss:$8 sps:$4 sm:$0xff]   ;;  %v2330_v29 = vld [vmem:[%s2954_s14] ss:$8 sps:$4 sm:$0xff]   ;;  %v1002_v40 = vld [vmem:[#allocation3 + $0xb0] sm:$0xff] }
 0x1f7   : > { %s1888_s15 = sshll.u32 %s3443_s13, 6  ;;  %v1018_v43 = vld [vmem:[#allocation3 + $0x38] sm:$0xff]  ;;  %v1003_v47 = vld [vmem:[#allocation3] sm:$0xff]  ;;  %v1021_v58 = vld [vmem:[#allocation3 + $0xc8] sm:$0xff]  ;;  %p1844_p12 = scmp.ne.s32.totalorder %s3443_s13, 1 }
 0x1f8   : > { %1200 = vmatpush1.bf16.msra.mxu0 %v2312_v16  ;;  %2042 = vmatpush1.bf16.msra.mxu1 %v2312_v16  ;;  %s3174_s1 = scalar_lea.vmem [#allocation2], %s1888_s15  ;;  %v1019_v48 = vld [vmem:[#allocation3 + $0x58] sm:$0xff]  ;;  %v1020_v51 = vld [vmem:[#allocation3 + $0x40] sm:$0xff]  ;;  %v1006_v1 = vld [vmem:[#allocation3 + $0x50] sm:$0xff] }
 0x1f9   : > { %1201 = vmatprep.subr.bf16.mxu0 %v2313_v17  ;;  %2035 = vmatprep.subr.bf16.mxu1 %v2313_v17  ;;  %v2331_v30 = vld [vmem:[%s3174_s1] sm:$0xff]   ;;  %v2333_v32 = vld [vmem:[%s3174_s1 + $0x8] sm:$0xff]   ;;  %v2335_v35 = vld [vmem:[%s3174_s1 + $0x10] sm:$0xff]  }
 0x1fa   : > { %v2332_v31 = vld [vmem:[%s3174_s1 + $0x20] sm:$0xff]   ;;  %v2334_v33 = vld [vmem:[%s3174_s1 + $0x28] sm:$0xff]   ;;  %v2336_v36 = vld [vmem:[%s3174_s1 + $0x30] sm:$0xff]  }
 0x1fb   : > { %v2337_v37 = vld [vmem:[%s3174_s1 + $0x18] sm:$0xff]   ;;  %v1022_v2 = vld [vmem:[#allocation3 + $0xe0] sm:$0xff]  ;;  %v1007_v8 = vld [vmem:[#allocation3 + $0x68] sm:$0xff] }
 0x1fc   : > { %1202 = vmatpush1.bf16.msra.mxu0 %v2315_v42  ;;  %2043 = vmatpush1.bf16.msra.mxu1 %v2315_v42  ;;  %v2338_v38 = vld [vmem:[%s3174_s1 + $0x38] sm:$0xff]   ;;  %v1023_v62 = vld [vmem:[#allocation3 + $0x90] sm:$0xff]  ;;  %v1009_v25 = vld [vmem:[#allocation3 + $0x48] sm:$0xff] }
 0x1fd   : > { %1203 = vmatprep.subr.bf16.mxu0 %v2316_v34  ;;  %2036 = vmatprep.subr.bf16.mxu1 %v2316_v34  ;;  %v1004_v6 = vld [vmem:[#allocation3 + $0xd8] sm:$0xff]  ;;  %v1008_v12 = vld [vmem:[#allocation3 + $0x30] sm:$0xff]  ;;  %v1010_v34 = vld [vmem:[#allocation3 + $0x80] sm:$0xff] }
 0x1fe   : > { %v1005_v57 = vld [vmem:[#allocation3 + $0x18] sm:$0xff]  ;;  %v1024_v13 = vld [vmem:[#allocation3 + $0x70] sm:$0xff] }
 0x200   : > { %1204 = vmatpush1.bf16.msra.mxu0 %v2318_v54  ;;  %2044 = vmatpush1.bf16.msra.mxu1 %v2318_v54  ;;  %v1026_v54 = vld [vmem:[#allocation3 + $0xa8] sm:$0xff] }
 0x201   : > { %1205 = vmatprep.subr.bf16.mxu0 %v2319_v18  ;;  %2037 = vmatprep.subr.bf16.mxu1 %v2319_v18 }
 0x204   : > { %1206 = vmatpush1.bf16.msra.mxu0 %v2321_v21  ;;  %2045 = vmatpush1.bf16.msra.mxu1 %v2321_v21 }
 0x205   : > { %1207 = vmatprep.subr.bf16.mxu0 %v2322_v22  ;;  %2038 = vmatprep.subr.bf16.mxu1 %v2322_v22 }
 0x208   : > { %1208 = vmatpush1.bf16.msra.mxu0 %v2324_v23  ;;  %2046 = vmatpush1.bf16.msra.mxu1 %v2324_v23 }
 0x209   : > { %1209 = vmatprep.subr.bf16.mxu0 %v2325_v24  ;;  %2039 = vmatprep.subr.bf16.mxu1 %v2325_v24  ;;  %v1011_v24 = vld [vmem:[#allocation3 + $0x88] sm:$0xff] }
 0x20c   : > { %1210 = vmatpush1.bf16.msra.mxu0 %v2327_v26  ;;  %2047 = vmatpush1.bf16.msra.mxu1 %v2327_v26  ;;  %v1027_v26 = vld [vmem:[#allocation3 + $0xd0] sm:$0xff] }
 0x20d   : > { %1211 = vmatprep.subr.bf16.mxu0 %v2328_v27  ;;  %2040 = vmatprep.subr.bf16.mxu1 %v2328_v27 }
 0x210   : > { %1212 = vmatpush1.bf16.msra.mxu0 %v2330_v29  ;;  %2048 = vmatpush1.bf16.msra.mxu1 %v2330_v29 }
 0x213   : > { %1230 = vmatmul.mubr.bf16.vlgmr.msra.gmra.mxu0 %v2331_v30  ;;  %1270 = vmatmul.mubr.bf16.vlgmr.msra.gmra.mxu1 %v2332_v31 }
 0x214   : > { %1239 = vmatprep.mubr.bf16.mxu0 %v2626_v41  ;;  %1279 = vmatprep.mubr.bf16.mxu1 %v2626_v41 }
 0x21b   : > { %1240 = vmatmul.mubr.bf16.gmra.mxu0 %v2333_v32  ;;  %1280 = vmatmul.mubr.bf16.gmra.mxu1 %v2334_v33  ;;  %v1012_v32 = vld [vmem:[#allocation3 + $0xe8] sm:$0xff]  ;;  %v1028_v33 = vld [vmem:[#allocation3 + $0x10] sm:$0xff] }
 0x21c   : > { %1249 = vmatprep.mubr.bf16.mxu0 %v2626_v41  ;;  %1289 = vmatprep.mubr.bf16.mxu1 %v2626_v41 }
 0x223   : > { %1250 = vmatmul.mubr.bf16.gmra.mxu0 %v2335_v35  ;;  %1290 = vmatmul.mubr.bf16.gmra.mxu1 %v2336_v36 }
 0x224   : > { %1259 = vmatprep.mubr.bf16.mxu0 %v2626_v41  ;;  %1299 = vmatprep.mubr.bf16.mxu1 %v2626_v41  ;;  %v1025_v41 = vld [vmem:[#allocation3 + $0xc0] sm:$0xff] }
 0x22b   : > { %1260 = vmatmul.mubr.bf16.gmra.mxu0 %v2337_v37  ;;  %1300 = vmatmul.mubr.bf16.gmra.mxu1 %v2338_v38 }
 0x2d3   : > { %v1231_v45 = vpop.f32.mrf.mxu0  ;;  %v1271_v46 = vpop.f32.mrf.mxu1 }
 0x2d4   : > { %v1310_v5 = vadd.f32 %v1231_v45, %v1002_v40  ;;  %v1326_v20 = vadd.f32 %v1271_v46, %v1018_v43  ;;  %v1013_v40 = vld [vmem:[#allocation3 + $0xb8] sm:$0xff]  ;;  %v1029_v43 = vld [vmem:[#allocation3 + $0x28] sm:$0xff] }
 0x2d5   : > { %v1233_v49 = vpop.f32.mrf.mxu0  ;;  %v1273_v50 = vpop.f32.mrf.mxu1 }
 0x2d6   : > { %1342 = vst [vmem:[#allocation3 + $0xb0] sm:$0xff] %v1310_v5  ;;  %1358 = vst [vmem:[#allocation3 + $0x38] sm:$0xff] %v1326_v20  ;;  %v1311_v52 = vadd.f32 %v1233_v49, %v1003_v47  ;;  %v1327_v55 = vadd.f32 %v1273_v50, %v1019_v48  ;;  %v1014_v5 = vld [vmem:[#allocation3 + $0x60] sm:$0xff] }
 0x2d7   : > { %v1235_v28 = vpop.f32.mrf.mxu0  ;;  %v1275_v56 = vpop.f32.mrf.mxu1  ;;  %v1030_v20 = vld [vmem:[#allocation3 + $0xa0] sm:$0xff] }
 0x2d8   : > { %1343 = vst [vmem:[#allocation3] sm:$0xff] %v1311_v52  ;;  %1359 = vst [vmem:[#allocation3 + $0x58] sm:$0xff] %v1327_v55  ;;  %v1312_v59 = vadd.f32 %v1235_v28, %v1004_v6  ;;  %v1328_v60 = vadd.f32 %v1275_v56, %v1020_v51  ;;  %v1015_v52 = vld [vmem:[#allocation3 + $0xf0] sm:$0xff]  ;;  %v1031_v55 = vld [vmem:[#allocation3 + $0xf8] sm:$0xff] }
 0x2d9   : > { %v1237_v61 = vpop.f32.mrf.mxu0  ;;  %v1277_v63 = vpop.f32.mrf.mxu1 }
 0x2da   : > { %1344 = vst [vmem:[#allocation3 + $0xd8] sm:$0xff] %v1312_v59  ;;  %1360 = vst [vmem:[#allocation3 + $0x40] sm:$0xff] %v1328_v60  ;;  %v1313_v3 = vadd.f32 %v1237_v61, %v1005_v57  ;;  %v1329_v4 = vadd.f32 %v1277_v63, %v1021_v58  ;;  %v1016_v59 = vld [vmem:[#allocation3 + $0x8] sm:$0xff]  ;;  %v1032_v60 = vld [vmem:[#allocation3 + $0x20] sm:$0xff] }
 0x2db   : > { %v1241_v7 = vpop.f32.mrf.mxu0  ;;  %v1281_v39 = vpop.f32.mrf.mxu1 }
 0x2dc   : > { %1345 = vst [vmem:[#allocation3 + $0x18] sm:$0xff] %v1313_v3  ;;  %1361 = vst [vmem:[#allocation3 + $0xc8] sm:$0xff] %v1329_v4  ;;  %v1314_v9 = vadd.f32 %v1241_v7, %v1006_v1  ;;  %v1330_v44 = vadd.f32 %v1281_v39, %v1022_v2  ;;  %v1017_v3 = vld [vmem:[#allocation3 + $0x78] sm:$0xff] }
 0x2dd   : > { %v1243_v0 = vpop.f32.mrf.mxu0  ;;  %v1283_v11 = vpop.f32.mrf.mxu1  ;;  %v1033_v4 = vld [vmem:[#allocation3 + $0x98] sm:$0xff] }
 0x2de   : > { %1346 = vst [vmem:[#allocation3 + $0x50] sm:$0xff] %v1314_v9  ;;  %1362 = vst [vmem:[#allocation3 + $0xe0] sm:$0xff] %v1330_v44  ;;  %v1315_v53 = vadd.f32 %v1243_v0, %v1007_v8  ;;  %v1331_v14 = vadd.f32 %v1283_v11, %v1023_v62 }
 0x2df   : > { %v1245_v15 = vpop.f32.mrf.mxu0  ;;  %v1285_v19 = vpop.f32.mrf.mxu1 }
 0x2e0   : > { %1347 = vst [vmem:[#allocation3 + $0x68] sm:$0xff] %v1315_v53  ;;  %1363 = vst [vmem:[#allocation3 + $0x90] sm:$0xff] %v1331_v14  ;;  %v1316_v10 = vadd.f32 %v1245_v15, %v1008_v12  ;;  %v1332_v16 = vadd.f32 %v1285_v19, %v1024_v13 }
 0x2e1   : > { %v1247_v17 = vpop.f32.mrf.mxu0  ;;  %v1287_v42 = vpop.f32.mrf.mxu1 }
 0x2e2   : > { %1348 = vst [vmem:[#allocation3 + $0x30] sm:$0xff] %v1316_v10  ;;  %1364 = vst [vmem:[#allocation3 + $0x70] sm:$0xff] %v1332_v16  ;;  %v1317_v18 = vadd.f32 %v1247_v17, %v1009_v25  ;;  %v1333_v21 = vadd.f32 %v1287_v42, %v1025_v41 }
 0x2e3   : > { %v1251_v22 = vpop.f32.mrf.mxu0  ;;  %v1291_v23 = vpop.f32.mrf.mxu1 }
 0x2e4   : > { %1349 = vst [vmem:[#allocation3 + $0x48] sm:$0xff] %v1317_v18  ;;  %1365 = vst [vmem:[#allocation3 + $0xc0] sm:$0xff] %v1333_v21  ;;  %v1318_v27 = vadd.f32 %v1251_v22, %v1010_v34  ;;  %v1334_v29 = vadd.f32 %v1291_v23, %v1026_v54 }
 0x2e5   : > { %v1253_v30 = vpop.f32.mrf.mxu0  ;;  %v1293_v31 = vpop.f32.mrf.mxu1 }
 0x2e6   : > { %1350 = vst [vmem:[#allocation3 + $0x80] sm:$0xff] %v1318_v27  ;;  %1366 = vst [vmem:[#allocation3 + $0xa8] sm:$0xff] %v1334_v29  ;;  %v1319_v35 = vadd.f32 %v1253_v30, %v1011_v24  ;;  %v1335_v36 = vadd.f32 %v1293_v31, %v1027_v26 }
 0x2e7   : > { %v1255_v37 = vpop.f32.mrf.mxu0  ;;  %v1295_v38 = vpop.f32.mrf.mxu1 }
 0x2e8   : > { %1351 = vst [vmem:[#allocation3 + $0x88] sm:$0xff] %v1319_v35  ;;  %1367 = vst [vmem:[#allocation3 + $0xd0] sm:$0xff] %v1335_v36  ;;  %v1320_v45 = vadd.f32 %v1255_v37, %v1012_v32  ;;  %v1336_v46 = vadd.f32 %v1295_v38, %v1028_v33 }
 0x2e9   : > { %v1257_v47 = vpop.f32.mrf.mxu0  ;;  %v1297_v48 = vpop.f32.mrf.mxu1 }
 0x2ea   : > { %1352 = vst [vmem:[#allocation3 + $0xe8] sm:$0xff] %v1320_v45  ;;  %1368 = vst [vmem:[#allocation3 + $0x10] sm:$0xff] %v1336_v46  ;;  %v1321_v49 = vadd.f32 %v1257_v47, %v1013_v40  ;;  %v1337_v50 = vadd.f32 %v1297_v48, %v1029_v43 }
 0x2eb   : > { %v1261_v6 = vpop.f32.mrf.mxu0  ;;  %v1301_v51 = vpop.f32.mrf.mxu1 }
 0x2ec   : > { %1353 = vst [vmem:[#allocation3 + $0xb8] sm:$0xff] %v1321_v49  ;;  %1369 = vst [vmem:[#allocation3 + $0x28] sm:$0xff] %v1337_v50  ;;  %v1322_v28 = vadd.f32 %v1261_v6, %v1014_v5  ;;  %v1338_v56 = vadd.f32 %v1301_v51, %v1030_v20 }
 0x2ed   : > { %v1263_v57 = vpop.f32.mrf.mxu0  ;;  %v1303_v58 = vpop.f32.mrf.mxu1 }
 0x2ee   : > { %1354 = vst [vmem:[#allocation3 + $0x60] sm:$0xff] %v1322_v28  ;;  %1370 = vst [vmem:[#allocation3 + $0xa0] sm:$0xff] %v1338_v56  ;;  %v1323_v61 = vadd.f32 %v1263_v57, %v1015_v52  ;;  %v1339_v63 = vadd.f32 %v1303_v58, %v1031_v55 }
 0x2ef   : > { %v1265_v1 = vpop.f32.mrf.mxu0  ;;  %v1305_v2 = vpop.f32.mrf.mxu1 }
 0x2f0   : > { %1355 = vst [vmem:[#allocation3 + $0xf0] sm:$0xff] %v1323_v61  ;;  %1371 = vst [vmem:[#allocation3 + $0xf8] sm:$0xff] %v1339_v63  ;;  %v1324_v7 = vadd.f32 %v1265_v1, %v1016_v59  ;;  %v1340_v39 = vadd.f32 %v1305_v2, %v1032_v60  ;;  %1377 = sbr.rel (%p1844_p12) target bundleno = 781 (0x30d), region = 64 }
 0x2f1   : > { %v1267_v8 = vpop.f32.mrf.mxu0  ;;  %v1307_v62 = vpop.f32.mrf.mxu1 }
 0x2f2   : > { %1356 = vst [vmem:[#allocation3 + $0x8] sm:$0xff] %v1324_v7  ;;  %1372 = vst [vmem:[#allocation3 + $0x20] sm:$0xff] %v1340_v39  ;;  %v1325_v9 = vadd.f32 %v1267_v8, %v1017_v3  ;;  %v1341_v44 = vadd.f32 %v1307_v62, %v1033_v4 }
 0x2f4   : > { %1357 = vst [vmem:[#allocation3 + $0x78] sm:$0xff] %v1325_v9  ;;  %1373 = vst [vmem:[#allocation3 + $0x98] sm:$0xff] %v1341_v44 }
 0x2f5   : > { %v1412_v0 = vlaneseq  ;;  %v1410_v12 = vld [vmem:[%s402_s30] sm:$0x3]  ;;  %v1378_v13 = vld [vmem:[#allocation3 + $0xb0] sm:$0xff]  ;;  %v1380_v19 = vld [vmem:[#allocation3 + $0xd8] sm:$0xff] }
 0x2f6   : > { %v1379_v53 = vld [vmem:[#allocation3] sm:$0xff]  ;;  %v1381_v25 = vld [vmem:[#allocation3 + $0x18] sm:$0xff]  ;;  %v1382_v41 = vld [vmem:[#allocation3 + $0x50] sm:$0xff] }
 0x2f7   : > { %v1413_v11 = vshrl.u32 %v1412_v0, 7  ;;  %v1383_v17 = vld [vmem:[#allocation3 + $0x68] sm:$0xff]  ;;  %v1384_v42 = vld [vmem:[#allocation3 + $0x30] sm:$0xff]  ;;  %v1386_v54 = vld [vmem:[#allocation3 + $0x80] sm:$0xff] }
 0x2f8   : > { %v1385_v34 = vld [vmem:[#allocation3 + $0x48] sm:$0xff]  ;;  %v1389_v27 = vld [vmem:[#allocation3 + $0xb8] sm:$0xff]  ;;  %v1390_v33 = vld [vmem:[#allocation3 + $0x60] sm:$0xff] }
 0x2f9   : > { %v1414_v14 = vsub.s32 0, %v1413_v11  ;;  %v1418_v15 = vsub.s32 1, %v1413_v11  ;;  %v1387_v18 = vld [vmem:[#allocation3 + $0x88] sm:$0xff]  ;;  %v1391_v35 = vld [vmem:[#allocation3 + $0xf0] sm:$0xff]  ;;  %v1394_v46 = vld [vmem:[#allocation3 + $0x38] sm:$0xff] }
 0x2fa   : > { %v1388_v26 = vld [vmem:[#allocation3 + $0xe8] sm:$0xff]  ;;  %v1395_v47 = vld [vmem:[#allocation3 + $0x58] sm:$0xff]  ;;  %v1396_v50 = vld [vmem:[#allocation3 + $0x40] sm:$0xff] }
 0x2fb   : > { %v3205_v10 = vrot.slane %v1410_v12, %v1414_v14  ;;  %v3207_v16 = vrot.slane %v1410_v12, %v1418_v15  ;;  %v1392_v36 = vld [vmem:[#allocation3 + $0x8] sm:$0xff]  ;;  %v1393_v45 = vld [vmem:[#allocation3 + $0x78] sm:$0xff]  ;;  %v1398_v51 = vld [vmem:[#allocation3 + $0xe0] sm:$0xff] }
 0x2fc   : > { %v1397_v6 = vld [vmem:[#allocation3 + $0xc8] sm:$0xff]  ;;  %v1399_v57 = vld [vmem:[#allocation3 + $0x90] sm:$0xff]  ;;  %v1401_v1 = vld [vmem:[#allocation3 + $0xc0] sm:$0xff] }
 0x2fd   : > { %v1422_v21 = vadd.f32 %v3205_v10, %v1378_v13  ;;  %v1423_v22 = vadd.f32 %v3207_v16, %v1379_v53  ;;  %v1424_v23 = vadd.f32 %v3205_v10, %v1380_v19  ;;  %v1425_v24 = vadd.f32 %v3207_v16, %v1381_v25  ;;  %v1400_v58 = vld [vmem:[#allocation3 + $0x70] sm:$0xff]  ;;  %v1402_v2 = vld [vmem:[#allocation3 + $0xa8] sm:$0xff]  ;;  %v1406_v44 = vld [vmem:[#allocation3 + $0xa0] sm:$0xff] }
 0x2fe   : > { %v1426_v29 = vadd.f32 %v3205_v10, %v1382_v41  ;;  %v1427_v30 = vadd.f32 %v3207_v16, %v1383_v17  ;;  %v1428_v31 = vadd.f32 %v3205_v10, %v1384_v42  ;;  %v1429_v32 = vadd.f32 %v3207_v16, %v1385_v34  ;;  %v1403_v3 = vld [vmem:[#allocation3 + $0xd0] sm:$0xff]  ;;  %v1405_v9 = vld [vmem:[#allocation3 + $0x28] sm:$0xff]  ;;  %v1407_v53 = vld [vmem:[#allocation3 + $0xf8] sm:$0xff] }
 0x2ff   : > { %v1889_v37 = vpack.c.bf16 %v1423_v22, %v1422_v21  ;;  %v1890_v38 = vpack.c.bf16 %v1425_v24, %v1424_v23  ;;  %v1430_v40 = vadd.f32 %v3205_v10, %v1386_v54  ;;  %v1431_v43 = vadd.f32 %v3207_v16, %v1387_v18  ;;  %v1404_v62 = vld [vmem:[#allocation3 + $0x10] sm:$0xff]  ;;  %v1408_v14 = vld [vmem:[#allocation3 + $0x20] sm:$0xff]  ;;  %v1409_v17 = vld [vmem:[#allocation3 + $0x98] sm:$0xff] }
 0x300   : > { %v1891_v48 = vpack.c.bf16 %v1427_v30, %v1426_v29  ;;  %v1892_v5 = vpack.c.bf16 %v1429_v32, %v1428_v31  ;;  %v1432_v20 = vadd.f32 %v3205_v10, %v1388_v26  ;;  %v1433_v49 = vadd.f32 %v3207_v16, %v1389_v27 }
 0x301   : > { %1550 = vst [vmem:[%s2982_s25] sm:$0xff] %v1889_v37  ;;  %1551 = vst [vmem:[%s2982_s25 + $0x8] sm:$0xff] %v1890_v38  ;;  %v1893_v52 = vpack.c.bf16 %v1431_v43, %v1430_v40  ;;  %v1434_v55 = vadd.f32 %v3205_v10, %v1390_v33  ;;  %v1435_v28 = vadd.f32 %v3207_v16, %v1391_v35 }
 0x302   : > { %v1436_v56 = vadd.f32 %v3205_v10, %v1392_v36  ;;  %1552 = vst [vmem:[%s2982_s25 + $0x10] sm:$0xff] %v1891_v48  ;;  %1553 = vst [vmem:[%s2982_s25 + $0x18] sm:$0xff] %v1892_v5  ;;  %v1894_v59 = vpack.c.bf16 %v1433_v49, %v1432_v20  ;;  %v1437_v60 = vadd.f32 %v3207_v16, %v1393_v45 }
 0x303   : > { %v1438_v61 = vadd.f32 %v3205_v10, %v1394_v46  ;;  %v1439_v63 = vadd.f32 %v3207_v16, %v1395_v47  ;;  %1554 = vst [vmem:[%s2982_s25 + $0x20] sm:$0xff] %v1893_v52  ;;  %v1895_v4 = vpack.c.bf16 %v1435_v28, %v1434_v55  ;;  %v1440_v7 = vadd.f32 %v3205_v10, %v1396_v50 }
 0x304   : > { %v1441_v39 = vadd.f32 %v3207_v16, %v1397_v6  ;;  %v1442_v8 = vadd.f32 %v3205_v10, %v1398_v51  ;;  %1555 = vst [vmem:[%s2982_s25 + $0x28] sm:$0xff] %v1894_v59  ;;  %v1896_v0 = vpack.c.bf16 %v1437_v60, %v1436_v56  ;;  %v1443_v12 = vadd.f32 %v3207_v16, %v1399_v57 }
 0x305   : > { %v1897_v11 = vpack.c.bf16 %v1439_v63, %v1438_v61  ;;  %v1444_v13 = vadd.f32 %v3205_v10, %v1400_v58  ;;  %1556 = vst [vmem:[%s2982_s25 + $0x30] sm:$0xff] %v1895_v4  ;;  %v1445_v19 = vadd.f32 %v3207_v16, %v1401_v1  ;;  %v1446_v25 = vadd.f32 %v3205_v10, %v1402_v2 }
 0x306   : > { %v1898_v15 = vpack.c.bf16 %v1441_v39, %v1440_v7  ;;  %v1447_v41 = vadd.f32 %v3207_v16, %v1403_v3  ;;  %1557 = vst [vmem:[%s2982_s25 + $0x38] sm:$0xff] %v1896_v0  ;;  %v1899_v42 = vpack.c.bf16 %v1443_v12, %v1442_v8  ;;  %v1448_v34 = vadd.f32 %v3205_v10, %v1404_v62 }
 0x307   : > { %1558 = vst [vmem:[%s2982_s25 + $0x40] sm:$0xff] %v1897_v11  ;;  %v1449_v54 = vadd.f32 %v3207_v16, %v1405_v9  ;;  %v1450_v18 = vadd.f32 %v3205_v10, %v1406_v44  ;;  %v1900_v21 = vpack.c.bf16 %v1445_v19, %v1444_v13  ;;  %v1451_v23 = vadd.f32 %v3207_v16, %v1407_v53 }
 0x308   : > { %1559 = vst [vmem:[%s2982_s25 + $0x48] sm:$0xff] %v1898_v15  ;;  %v1901_v22 = vpack.c.bf16 %v1447_v41, %v1446_v25  ;;  %v1452_v24 = vadd.f32 %v3205_v10, %v1408_v14  ;;  %1560 = vst [vmem:[%s2982_s25 + $0x50] sm:$0xff] %v1899_v42  ;;  %v1453_v27 = vadd.f32 %v3207_v16, %v1409_v17 }
 0x309   : > { %v1902_v26 = vpack.c.bf16 %v1449_v54, %v1448_v34  ;;  %1561 = vst [vmem:[%s2982_s25 + $0x58] sm:$0xff] %v1900_v21  ;;  %v1903_v29 = vpack.c.bf16 %v1451_v23, %v1450_v18 }
 0x30a   : > { %1562 = vst [vmem:[%s2982_s25 + $0x60] sm:$0xff] %v1901_v22  ;;  %v1904_v30 = vpack.c.bf16 %v1453_v27, %v1452_v24 }
 0x30b   : > { %1563 = vst [vmem:[%s2982_s25 + $0x68] sm:$0xff] %v1902_v26  ;;  %1564 = vst [vmem:[%s2982_s25 + $0x70] sm:$0xff] %v1903_v29 }
 0x30c   : > { %1565 = vst [vmem:[%s2982_s25 + $0x78] sm:$0xff] %v1904_v30 }
 0x30d PF: > { %s3445_s6 = sld [smem:[#allocation24_spill]]  ;;  %s1583_s26 = sshll.u32 %s2982_s25, 4  ;;  %s3260_s26 = int_to_ptr.vmem [resolvable:$true] %s1583_s26 }
 0x30e   : > { %s3446_s27 = sld [smem:[#allocation37_spill]]  ;;  %s3269_s22 = scalar_lea.sflag [#allocation6], %s384_s0 }
 0x30f   : > { %s2423_s29 = scalar_lea.vmem %s3260_s26, 2048  ;;  %p3448_p8 = scmp.ne.s32.totalorder %s3417_s5, 0 }
 0x310   : > { %p2424_p4 = scmp.ne.s32.totalorder %s3260_s26, %s2423_s29 }
 0x312   : > { %p2425_p1 = pnand %p2424_p4, %p3448_p8 }
 0x313   : > { %s1905_s30 = sshll.u32 %s3445_s6, 6 }
 0x314   : > { %s1580_s24 = sadd.s32 %s1905_s30, %s2965_s16  ;;  %s3447_s12 = smov %s3446_s27 }
 0x315   : > { %s1865_s2 = sshll.u32 %s1580_s24, 6  ;;  %p2426_p11 = pneg %p2425_p1 }
 0x316   : > { %s3265_s18 = scalar_lea.hbm %s3446_s27, %s1865_s2  ;;  %s2627_s16 = smov [#allocation10]  }
 0x317   : > { %s2427_s25 = sshll.u32 %s2627_s16, 4  ;;  %s2428_s25 = int_to_ptr.vmem [resolvable:$false] %s2427_s25 }
 0x318   : > { %s2429_s13 = scalar_lea.vmem %s2428_s25, 4096  ;;  %p2430_p13 = scmp.lt.s32.totalorder %s3260_s26, %s2428_s25 }
 0x319   : > { %p2431_p0 = scmp.lt.s32.totalorder %s2429_s13, %s2423_s29 }
 0x31b   : > { %p2432_p7 = por %p2431_p0, %p2430_p13 }
 0x31d   : > { %p2433_p2 = pnand %p2432_p7, %p2426_p11 }
 0x31f   : > { %2436 = shalt.err (!%p2433_p2)
}
 0x320   : > { %s2437_s0 = scalar_lea.hbm %s3265_s18, 2048  ;;  %s2441_s14 = scalar_lea.hbm %s3447_s12, 8192 }
 0x321   : > { %p2438_p10 = scmp.ne.s32.totalorder %s3265_s18, %s2437_s0  ;;  %p2442_p6 = scmp.lt.s32.totalorder %s3265_s18, %s3447_s12 }
 0x322   : > { %p2443_p5 = scmp.lt.s32.totalorder %s2441_s14, %s2437_s0 }
 0x323   : > { %p2439_p9 = pnand %p2438_p10, %p3448_p8 }
 0x324   : > { %p2444_p12 = por %p2443_p5, %p2442_p6 }
 0x325   : > { %p2440_p3 = pneg %p2439_p9 }
 0x327   : > { %p2445_p4 = pnand %p2444_p12, %p2440_p3 }
 0x329   : > { %2448 = shalt.err (!%p2445_p4)
}
 0x32a   : > { %s2628_s6 = smov 128   ;;  %s2629_s30 = smov 256  }
 0x32b   : > { %s2630_s24 = smov 8  }
 0x32c   : > { %2055 = dma.vmem_to_hbm [thread:$0]  (%p3448_p8), %s3260_s26, 2048, %s3265_s18, %s3269_s22, %s2628_s6, %s2629_s30, %s2630_s24  }
 0x32d PF: > { %s3449_s2 = sld [smem:[#allocation15_spill]]  ;;  %p2072_p1 = scmp.ge.s32.totalorder %s2615_s11, 2 }
 0x32e   : > { %p3450_p11 = scmp.ne.s32.totalorder %s3418_s7, 0 }
 0x330   : > { %p2068_p13 = pnand %p2072_p1, %p3450_p11 }
 0x332   : > { %p2069_p0 = pneg %p2068_p13 }
 0x333   : > { %s1598_s17 = sand.u32 1, %s3449_s2  }
 0x334   : > { %s1599_s21 = scalar_lea.sflag [#allocation6], %s1598_s17 }
 0x335   : > { %2538 = dma.done.wait (%p2069_p0), %s1599_s21, 2048  }
 0x336   : > { %2540 = vsyncadd (%p2069_p0), %s1599_s21, 4294965248  ;;  %s24_s11 = sadd.s32 1, %s2615_s11   ;;  %s3452_s21 = sld [smem:[#allocation17_spill]] }
 0x337   : > { %p3297_p7 = scmp.ge.s32.totalorder %s24_s11, 10   ;;  %s3453_s22 = sld [smem:[#allocation18_spill]] }
 0x338   : > { %s3454_s24 = sld [smem:[#allocation19_spill]]  ;;  %s3461_s18 = smov %s2547_s19 }
 0x339   : > { %s3455_s25 = sld [smem:[#allocation20_spill]]  ;;  %s3463_s19 = smov %s2551_s20 }
 0x33a   : > { %s3456_s26 = sld [smem:[#allocation29_spill]]  ;;  %s3465_s20 = smov %s2869_s23 }
 0x33b   : > { %s3457_s5 = sld [smem:[#allocation21_spill]]  ;;  %s3467_s23 = smov %s2903_s4 }
 0x33c   : > { %s3458_s29 = sld [smem:[#allocation31_spill]]  ;;  %s3468_s27 = smov %s2583_s28 }
 0x33d   : > { %s3459_s7 = sld [smem:[#allocation25_spill]]  ;;  %s3470_s30 = smov %s2603_s8 }
 0x33e   : > { %s3460_s16 = sld [smem:[#allocation26_spill]]  ;;  %s3471_s6 = smov %s2607_s9 }
 0x33f   : > { %s3462_s13 = sld [smem:[#allocation27_spill]] }
 0x340   : > { %s3464_s10 = sld [smem:[#allocation30_spill]] }
 0x341   : > { %s3469_s28 = smov %s3457_s5  ;;  %23 = sbr.rel (!%p3297_p7) target bundleno = 22 (0x16), region = 129 }
 0x344   : > { %s3472_s8 = smov %s3460_s16 }
 0x345   : > { %s3473_s9 = smov %s3462_s13 }
 0x346   :  { %1604 = vsyncpa [#allocation5], 1 }
 0x347   :  { %1606 = vsyncpa [#allocation5 + $0x1], 1 }
 0x348   :  { %1607 = vsyncpa [#allocation8], 1 }
 0x349   :  { %1609 = vsyncpa [#allocation8 + $0x1], 1 }
 0x34a   :  { %1610 = vsyncpa [#allocation6], 1 }
 0x34b   :  { %1612 = vsyncpa [#allocation6 + $0x1], 1 }

</bundles_post_ra>
